<compile_context>
chip_gen: v6e
topology: v6e:2x2x1
jax: 0.10.0
libtpu: 0.0.40
codegen_flags: <defaults>
</compile_context>

<pallas_src>
import functools

import jax
import jax.numpy as jnp
from jax.experimental import pallas as pl
from jax.experimental.pallas import tpu as pltpu


# ------------------------------ fused per-batch kernel ------------------------------ #

def _nsd_kernel(x_ref, t_ref, nsd_ref, best_val_ref, best_idx_ref, *,
                num_classes, include_background, num_out, h, w, hp, wp):
    """Grid = (batch, channel).  Streams the argmax over channels into VMEM scratch and,
    on the last channel step, computes per-class surface dice @ tolerance=1 and writes a
    (1, num_out) row of NSD values."""
    c_step = pl.program_id(1)
    xc = x_ref[0, 0]                              # (hp, wp) logits for channel c_step

    @pl.when(c_step == 0)
    def _():
        best_val_ref[...] = xc
        best_idx_ref[...] = jnp.zeros((hp, wp), jnp.int32)

    @pl.when(c_step > 0)
    def _():
        better = xc > best_val_ref[...]           # strict '>' keeps first maximal index
        best_val_ref[...] = jnp.where(better, xc, best_val_ref[...])
        best_idx_ref[...] = jnp.where(better, c_step, best_idx_ref[...])

    @pl.when(c_step == num_classes - 1)
    def _():
        f32 = jnp.float32
        idx = best_idx_ref[...]                   # predicted labels (padding -> 0)
        tgt = t_ref[0]                            # target labels    (padding -> 0)

        # 4-neighbour shifts via XLU rotations; wrap-around lands in the zero padding,
        # which acts exactly like the "outside the grid is background" rule.
        def ru(m): return pltpu.roll(m, 1, 0)        # m[i-1, j]
        def rd(m): return pltpu.roll(m, hp - 1, 0)   # m[i+1, j]
        def rl(m): return pltpu.roll(m, 1, 1)        # m[i, j-1]
        def rr(m): return pltpu.roll(m, wp - 1, 1)   # m[i, j+1]

        ones_col = jnp.ones((wp, 1), f32)

        def plane_sum(x):
            # Full-plane reduction on the (otherwise idle) MXU; 0/1/2 counts are exact
            # in f32 accumulation.  Only the tiny (hp, 1) column reduce stays on the XLU.
            col = jnp.dot(x, ones_col, preferred_element_type=f32)       # (hp, 1)
            return jnp.sum(col)                                          # scalar

        def boundary_labels(labels):
            # Class-agnostic boundary: a voxel is boundary iff any 4-neighbour (or the
            # image border / zero padding) carries a different label.  Encode as
            # where(boundary, label, -1); per-class boundary masks and dilations are
            # then pure compares -> no rolls inside the class loop.
            bnd = ((ru(labels) != labels) | (rd(labels) != labels) |
                   (rl(labels) != labels) | (rr(labels) != labels))
            lbl = jnp.where(bnd, labels, jnp.int32(-1))
            return (lbl, ru(lbl), rd(lbl), rl(lbl), rr(lbl))

        lP = boundary_labels(idx)                 # 8 rolls, class-count independent
        lG = boundary_labels(tgt)                 # 8 rolls, class-count independent

        lane = jax.lax.broadcasted_iota(jnp.int32, (1, num_out), 1)
        out_row = jnp.zeros((1, num_out), f32)
        c0 = 0 if include_background else 1

        def class_body(c, acc):                   # zero XLU rolls per class
            bP = lP[0] == c                                   # pred surface, class c
            bG = lG[0] == c                                   # gt surface, class c
            dP = bP | (lP[1] == c) | (lP[2] == c) | (lP[3] == c) | (lP[4] == c)
            dG = bG | (lG[1] == c) | (lG[2] == c) | (lG[3] == c) | (lG[4] == c)
            surf = plane_sum(bP.astype(f32) + bG.astype(f32))
            ovlp = plane_sum((bG & dP).astype(f32) + (bP & dG).astype(f32))
            nsd_c = ovlp / surf                   # 0/0 -> NaN (matches reference)
            return jnp.where(lane == (c - c0),
                             jnp.broadcast_to(nsd_c, (1, num_out)), acc)

        out_row = jax.lax.fori_loop(1, num_classes, class_body, out_row,
                                    unroll=num_classes <= 9)

        if include_background:
            # Label-compare boundaries treat background at the true image border as
            # interior; keep the mask-based path (reference behaviour) for class 0 only.
            row_i = jax.lax.broadcasted_iota(jnp.int32, (hp, wp), 0)
            col_i = jax.lax.broadcasted_iota(jnp.int32, (hp, wp), 1)
            valid = (row_i < h) & (col_i < w)
            P0 = ((idx == 0) & valid).astype(f32)
            G0 = ((tgt == 0) & valid).astype(f32)

            def bnd_mask(m):
                interior = ru(m) * rd(m) * rl(m) * rr(m)
                return m * (1.0 - interior)

            def dilate(m):
                return jnp.minimum(m + ru(m) + rd(m) + rl(m) + rr(m), 1.0)

            bP0 = bnd_mask(P0)
            bG0 = bnd_mask(G0)
            surf0 = plane_sum(bP0 + bG0)
            ovlp0 = plane_sum(bG0 * dilate(bP0) + bP0 * dilate(bG0))
            nsd0 = ovlp0 / surf0
            out_row = jnp.where(lane == 0,
                                jnp.broadcast_to(nsd0, (1, num_out)), out_row)

        nsd_ref[0] = out_row


# ----------------------------------- wrapper --------------------------------------- #

def _pad_dim(x, m):
    p = ((x + m - 1) // m) * m
    if p == x:
        p += m            # always leave >= 1 zero pad row/col (border = background)
    return p


def nsd_metric(logits, target, *, average="micro", include_background=False,
               softmax=True, tolerance=1):
    assert tolerance == 1, "kernel implements tolerance=1 mm with unit spacing"
    del softmax  # no-op: argmax(softmax(x)) == argmax(x)

    B, C, H, W = logits.shape
    assert C >= 2
    num_out = C if include_background else C - 1

    logits = logits.astype(jnp.float32)
    target = target.astype(jnp.int32)

    # (8, 128)-aligned, lane-dense spatial plane with a guaranteed zero ring at the
    # bottom/right (wrap-around of the rolls reuses it for the top/left borders).
    Hp = _pad_dim(H, 8)
    Wp = _pad_dim(W, 128)
    logits = jnp.pad(logits, ((0, 0), (0, 0), (0, Hp - H), (0, Wp - W)))
    target = jnp.pad(target, ((0, 0), (0, Hp - H), (0, Wp - W)))

    # Explicit scoped-VMEM budget: double-buffered 1-channel logit plane + target plane,
    # argmax scratch, ~12 label/boundary planes + transients in the finalize step.
    plane_bytes = Hp * Wp * 4
    vmem_limit = int(min(128 * 1024 * 1024,
                         max(32 * 1024 * 1024, 32 * plane_bytes + (2 << 20))))

    kernel = functools.partial(
        _nsd_kernel, num_classes=C, include_background=include_background,
        num_out=num_out, h=H, w=W, hp=Hp, wp=Wp)

    nsd = pl.pallas_call(
        kernel,
        out_shape=jax.ShapeDtypeStruct((B, 1, num_out), jnp.float32),
        grid=(B, C),
        in_specs=[pl.BlockSpec((1, 1, Hp, Wp), lambda b, c: (b, c, 0, 0)),
                  pl.BlockSpec((1, Hp, Wp), lambda b, c: (b, 0, 0))],
        out_specs=pl.BlockSpec((1, 1, num_out), lambda b, c: (b, 0, 0)),
        scratch_shapes=[pltpu.VMEM((Hp, Wp), jnp.float32),   # running argmax value
                        pltpu.VMEM((Hp, Wp), jnp.int32)],    # running argmax index
        compiler_params=pltpu.CompilerParams(
            dimension_semantics=("parallel", "arbitrary"),
            vmem_limit_bytes=vmem_limit),
    )(logits, target)

    nsd = nsd.reshape(B, num_out)                 # per (batch, class) NSD values
    if average == "micro":
        return jnp.mean(nsd)                      # mean over all (class, batch) pairs
    elif average == "macro":
        return jnp.mean(jnp.mean(nsd, axis=0))    # per-class mean over batch, then mean
    else:
        raise ValueError(average)


if __name__ == "__main__":
    key = jax.random.PRNGKey(0)
    k1, k2 = jax.random.split(key)
    B, C, H, W = 2, 4, 16, 16
    logits = jax.random.normal(k1, (B, C, H, W), dtype=jnp.float32)
    target = jax.random.randint(k2, (B, H, W), 0, C, dtype=jnp.int32)

    out = nsd_metric(logits, target, average="micro", include_background=False,
                     softmax=True, tolerance=1)
    out = jax.block_until_ready(out)
    print("KERNEL_OK")
</pallas_src>

<mosaic_0001>
module attributes {stable_mosaic.version = 11 : i64} {
  func.func @_nsd_kernel(%arg0: i32, %arg1: i32, %arg2: memref<1x1x24x128xf32, #tpu.memory_space<vmem>>, %arg3: memref<1x24x128xi32, #tpu.memory_space<vmem>>, %arg4: memref<1x1x3xf32, #tpu.memory_space<vmem>>, %arg5: memref<24x128xf32, #tpu.memory_space<vmem>>, %arg6: memref<24x128xi32, #tpu.memory_space<vmem>>) attributes {dimension_semantics = [#tpu.dimension_semantics<parallel>, #tpu.dimension_semantics<arbitrary>], iteration_bounds = array<i64: 2, 4>, scalar_prefetch = 0 : i64, scratch_operands = 2 : i64, tpu.core_type = #tpu.core_type<tc>, window_params = [{transform_indices = @transform_0, window_bounds = array<i64: 1, 1, 24, 128>}, {transform_indices = @transform_1, window_bounds = array<i64: 1, 24, 128>}, {transform_indices = @transform_2, window_bounds = array<i64: 1, 1, 3>}]} {
    %c0 = arith.constant 0 : index
    %c0_0 = arith.constant 0 : index
    %c0_1 = arith.constant 0 : index
    %c0_2 = arith.constant 0 : index
    %0 = vector.load %arg2[%c0, %c0_0, %c0_1, %c0_2] : memref<1x1x24x128xf32, #tpu.memory_space<vmem>>, vector<1x1x24x128xf32>
    %1 = vector.shape_cast %0 : vector<1x1x24x128xf32> to vector<24x128xf32>
    %c0_i32 = arith.constant 0 : i32
    %2 = arith.cmpi eq, %arg1, %c0_i32 : i32
    %3 = arith.extui %2 : i1 to i32
    %c0_i32_3 = arith.constant 0 : i32
    %4 = arith.cmpi ne, %3, %c0_i32_3 : i32
    scf.if %4 {
      %c0_7 = arith.constant 0 : index
      %c0_8 = arith.constant 0 : index
      %11 = vector.load %arg5[%c0_7, %c0_8] : memref<24x128xf32, #tpu.memory_space<vmem>>, vector<24x128xf32>
      tpu.vector_store %arg5[%c0_7, %c0_8], %1 {strides = array<i32>} : memref<24x128xf32, #tpu.memory_space<vmem>>, vector<24x128xf32>,
      %c0_i32_9 = arith.constant 0 : i32
      %12 = vector.broadcast %c0_i32_9 : i32 to vector<24x128xi32>
      %c0_10 = arith.constant 0 : index
      %c0_11 = arith.constant 0 : index
      %13 = vector.load %arg6[%c0_10, %c0_11] : memref<24x128xi32, #tpu.memory_space<vmem>>, vector<24x128xi32>
      tpu.vector_store %arg6[%c0_10, %c0_11], %12 {strides = array<i32>} : memref<24x128xi32, #tpu.memory_space<vmem>>, vector<24x128xi32>,
    } else {
    }
    %c0_i32_4 = arith.constant 0 : i32
    %5 = arith.cmpi sgt, %arg1, %c0_i32_4 : i32
    %6 = arith.extui %5 : i1 to i32
    %c0_i32_5 = arith.constant 0 : i32
    %7 = arith.cmpi ne, %6, %c0_i32_5 : i32
    scf.if %7 {
      %c0_7 = arith.constant 0 : index
      %c0_8 = arith.constant 0 : index
      %11 = vector.load %arg5[%c0_7, %c0_8] : memref<24x128xf32, #tpu.memory_space<vmem>>, vector<24x128xf32>
      %12 = arith.cmpf ogt, %1, %11 : vector<24x128xf32>
      %c0_9 = arith.constant 0 : index
      %c0_10 = arith.constant 0 : index
      %13 = vector.load %arg5[%c0_9, %c0_10] : memref<24x128xf32, #tpu.memory_space<vmem>>, vector<24x128xf32>
      %14 = arith.select %12, %1, %13 : vector<24x128xi1>, vector<24x128xf32>
      %c0_11 = arith.constant 0 : index
      %c0_12 = arith.constant 0 : index
      %15 = vector.load %arg5[%c0_11, %c0_12] : memref<24x128xf32, #tpu.memory_space<vmem>>, vector<24x128xf32>
      tpu.vector_store %arg5[%c0_11, %c0_12], %14 {strides = array<i32>} : memref<24x128xf32, #tpu.memory_space<vmem>>, vector<24x128xf32>,
      %c0_13 = arith.constant 0 : index
      %c0_14 = arith.constant 0 : index
      %16 = vector.load %arg6[%c0_13, %c0_14] : memref<24x128xi32, #tpu.memory_space<vmem>>, vector<24x128xi32>
      %17 = vector.broadcast %arg1 : i32 to vector<24x128xi32>
      %18 = arith.select %12, %17, %16 : vector<24x128xi1>, vector<24x128xi32>
      %c0_15 = arith.constant 0 : index
      %c0_16 = arith.constant 0 : index
      %19 = vector.load %arg6[%c0_15, %c0_16] : memref<24x128xi32, #tpu.memory_space<vmem>>, vector<24x128xi32>
      tpu.vector_store %arg6[%c0_15, %c0_16], %18 {strides = array<i32>} : memref<24x128xi32, #tpu.memory_space<vmem>>, vector<24x128xi32>,
    } else {
    }
    %c3_i32 = arith.constant 3 : i32
    %8 = arith.cmpi eq, %arg1, %c3_i32 : i32
    %9 = arith.extui %8 : i1 to i32
    %c0_i32_6 = arith.constant 0 : i32
    %10 = arith.cmpi ne, %9, %c0_i32_6 : i32
    scf.if %10 {
      %c0_7 = arith.constant 0 : index
      %c0_8 = arith.constant 0 : index
      %11 = vector.load %arg6[%c0_7, %c0_8] : memref<24x128xi32, #tpu.memory_space<vmem>>, vector<24x128xi32>
      %c0_9 = arith.constant 0 : index
      %c0_10 = arith.constant 0 : index
      %c0_11 = arith.constant 0 : index
      %12 = vector.load %arg3[%c0_9, %c0_10, %c0_11] : memref<1x24x128xi32, #tpu.memory_space<vmem>>, vector<1x24x128xi32>
      %13 = vector.shape_cast %12 : vector<1x24x128xi32> to vector<24x128xi32>
      %cst = arith.constant 1.000000e+00 : f32
      %14 = vector.broadcast %cst : f32 to vector<128x1xf32>
      %c1_i32 = arith.constant 1 : i32
      %15 = tpu.dynamic_rotate %11 by %c1_i32 dim 0 : vector<24x128xi32>, i32 -> vector<24x128xi32>
      %16 = arith.cmpi ne, %15, %11 : vector<24x128xi32>
      %c23_i32 = arith.constant 23 : i32
      %17 = tpu.dynamic_rotate %11 by %c23_i32 dim 0 : vector<24x128xi32>, i32 -> vector<24x128xi32>
      %18 = arith.cmpi ne, %17, %11 : vector<24x128xi32>
      %19 = arith.ori %16, %18 : vector<24x128xi1>
      %c1_i32_12 = arith.constant 1 : i32
      %20 = tpu.dynamic_rotate %11 by %c1_i32_12 dim 1 : vector<24x128xi32>, i32 -> vector<24x128xi32>
      %21 = arith.cmpi ne, %20, %11 : vector<24x128xi32>
      %22 = arith.ori %19, %21 : vector<24x128xi1>
      %c127_i32 = arith.constant 127 : i32
      %23 = tpu.dynamic_rotate %11 by %c127_i32 dim 1 : vector<24x128xi32>, i32 -> vector<24x128xi32>
      %24 = arith.cmpi ne, %23, %11 : vector<24x128xi32>
      %25 = arith.ori %22, %24 : vector<24x128xi1>
      %c-1_i32 = arith.constant -1 : i32
      %26 = vector.broadcast %c-1_i32 : i32 to vector<24x128xi32>
      %27 = arith.select %25, %11, %26 : vector<24x128xi1>, vector<24x128xi32>
      %c1_i32_13 = arith.constant 1 : i32
      %28 = tpu.dynamic_rotate %27 by %c1_i32_13 dim 0 : vector<24x128xi32>, i32 -> vector<24x128xi32>
      %c23_i32_14 = arith.constant 23 : i32
      %29 = tpu.dynamic_rotate %27 by %c23_i32_14 dim 0 : vector<24x128xi32>, i32 -> vector<24x128xi32>
      %c1_i32_15 = arith.constant 1 : i32
      %30 = tpu.dynamic_rotate %27 by %c1_i32_15 dim 1 : vector<24x128xi32>, i32 -> vector<24x128xi32>
      %c127_i32_16 = arith.constant 127 : i32
      %31 = tpu.dynamic_rotate %27 by %c127_i32_16 dim 1 : vector<24x128xi32>, i32 -> vector<24x128xi32>
      %c1_i32_17 = arith.constant 1 : i32
      %32 = tpu.dynamic_rotate %13 by %c1_i32_17 dim 0 : vector<24x128xi32>, i32 -> vector<24x128xi32>
      %33 = arith.cmpi ne, %32, %13 : vector<24x128xi32>
      %c23_i32_18 = arith.constant 23 : i32
      %34 = tpu.dynamic_rotate %13 by %c23_i32_18 dim 0 : vector<24x128xi32>, i32 -> vector<24x128xi32>
      %35 = arith.cmpi ne, %34, %13 : vector<24x128xi32>
      %36 = arith.ori %33, %35 : vector<24x128xi1>
      %c1_i32_19 = arith.constant 1 : i32
      %37 = tpu.dynamic_rotate %13 by %c1_i32_19 dim 1 : vector<24x128xi32>, i32 -> vector<24x128xi32>
      %38 = arith.cmpi ne, %37, %13 : vector<24x128xi32>
      %39 = arith.ori %36, %38 : vector<24x128xi1>
      %c127_i32_20 = arith.constant 127 : i32
      %40 = tpu.dynamic_rotate %13 by %c127_i32_20 dim 1 : vector<24x128xi32>, i32 -> vector<24x128xi32>
      %41 = arith.cmpi ne, %40, %13 : vector<24x128xi32>
      %42 = arith.ori %39, %41 : vector<24x128xi1>
      %c-1_i32_21 = arith.constant -1 : i32
      %43 = vector.broadcast %c-1_i32_21 : i32 to vector<24x128xi32>
      %44 = arith.select %42, %13, %43 : vector<24x128xi1>, vector<24x128xi32>
      %c1_i32_22 = arith.constant 1 : i32
      %45 = tpu.dynamic_rotate %44 by %c1_i32_22 dim 0 : vector<24x128xi32>, i32 -> vector<24x128xi32>
      %c23_i32_23 = arith.constant 23 : i32
      %46 = tpu.dynamic_rotate %44 by %c23_i32_23 dim 0 : vector<24x128xi32>, i32 -> vector<24x128xi32>
      %c1_i32_24 = arith.constant 1 : i32
      %47 = tpu.dynamic_rotate %44 by %c1_i32_24 dim 1 : vector<24x128xi32>, i32 -> vector<24x128xi32>
      %c127_i32_25 = arith.constant 127 : i32
      %48 = tpu.dynamic_rotate %44 by %c127_i32_25 dim 1 : vector<24x128xi32>, i32 -> vector<24x128xi32>
      %49 = tpu.iota {dimensions = array<i32: 1>} : vector<1x3xi32>
      %cst_26 = arith.constant 0.000000e+00 : f32
      %50 = vector.broadcast %cst_26 : f32 to vector<1x3xf32>
      %c1_i32_27 = arith.constant 1 : i32
      %51 = vector.broadcast %c1_i32_27 : i32 to vector<24x128xi32>
      %52 = arith.cmpi eq, %27, %51 : vector<24x128xi32>
      %53 = vector.broadcast %c1_i32_27 : i32 to vector<24x128xi32>
      %54 = arith.cmpi eq, %44, %53 : vector<24x128xi32>
      %55 = vector.broadcast %c1_i32_27 : i32 to vector<24x128xi32>
      %56 = arith.cmpi eq, %28, %55 : vector<24x128xi32>
      %57 = arith.ori %52, %56 : vector<24x128xi1>
      %58 = vector.broadcast %c1_i32_27 : i32 to vector<24x128xi32>
      %59 = arith.cmpi eq, %29, %58 : vector<24x128xi32>
      %60 = arith.ori %57, %59 : vector<24x128xi1>
      %61 = vector.broadcast %c1_i32_27 : i32 to vector<24x128xi32>
      %62 = arith.cmpi eq, %30, %61 : vector<24x128xi32>
      %63 = arith.ori %60, %62 : vector<24x128xi1>
      %64 = vector.broadcast %c1_i32_27 : i32 to vector<24x128xi32>
      %65 = arith.cmpi eq, %31, %64 : vector<24x128xi32>
      %66 = arith.ori %63, %65 : vector<24x128xi1>
      %67 = vector.broadcast %c1_i32_27 : i32 to vector<24x128xi32>
      %68 = arith.cmpi eq, %45, %67 : vector<24x128xi32>
      %69 = arith.ori %54, %68 : vector<24x128xi1>
      %70 = vector.broadcast %c1_i32_27 : i32 to vector<24x128xi32>
      %71 = arith.cmpi eq, %46, %70 : vector<24x128xi32>
      %72 = arith.ori %69, %71 : vector<24x128xi1>
      %73 = vector.broadcast %c1_i32_27 : i32 to vector<24x128xi32>
      %74 = arith.cmpi eq, %47, %73 : vector<24x128xi32>
      %75 = arith.ori %72, %74 : vector<24x128xi1>
      %76 = vector.broadcast %c1_i32_27 : i32 to vector<24x128xi32>
      %77 = arith.cmpi eq, %48, %76 : vector<24x128xi32>
      %78 = arith.ori %75, %77 : vector<24x128xi1>
      %79 = arith.extui %52 : vector<24x128xi1> to vector<24x128xi32>
      %80 = arith.sitofp %79 : vector<24x128xi32> to vector<24x128xf32>
      %81 = arith.extui %54 : vector<24x128xi1> to vector<24x128xi32>
      %82 = arith.sitofp %81 : vector<24x128xi32> to vector<24x128xf32>
      %83 = arith.addf %80, %82 : vector<24x128xf32>
      %cst_28 = arith.constant dense<0.000000e+00> : vector<24x1xf32>
      %84 = tpu.matmul %83, %14, %cst_28 {dimension_numbers = #tpu.dot_dimension_numbers<[1], [0], [0], [1], [0, 0, 1, 1], [], []>} : vector<24x128xf32>, vector<128x1xf32>, vector<24x1xf32> -> vector<24x1xf32>
      %85 = vector.shape_cast %84 : vector<24x1xf32> to vector<1x24x1xf32>
      %cst_29 = arith.constant dense<0.000000e+00> : vector<1xf32>
      %86 = vector.multi_reduction <add>, %85, %cst_29 [1, 2] : vector<1x24x1xf32> to vector<1xf32>
      %87 = vector.shape_cast %86 : vector<1xf32> to vector<1x1x1xf32>
      %88 = vector.extract %87[0, 0, 0] : f32 from vector<1x1x1xf32>
      %89 = arith.andi %54, %66 : vector<24x128xi1>
      %90 = arith.extui %89 : vector<24x128xi1> to vector<24x128xi32>
      %91 = arith.sitofp %90 : vector<24x128xi32> to vector<24x128xf32>
      %92 = arith.andi %52, %78 : vector<24x128xi1>
      %93 = arith.extui %92 : vector<24x128xi1> to vector<24x128xi32>
      %94 = arith.sitofp %93 : vector<24x128xi32> to vector<24x128xf32>
      %95 = arith.addf %91, %94 : vector<24x128xf32>
      %cst_30 = arith.constant dense<0.000000e+00> : vector<24x1xf32>
      %96 = tpu.matmul %95, %14, %cst_30 {dimension_numbers = #tpu.dot_dimension_numbers<[1], [0], [0], [1], [0, 0, 1, 1], [], []>} : vector<24x128xf32>, vector<128x1xf32>, vector<24x1xf32> -> vector<24x1xf32>
      %97 = vector.shape_cast %96 : vector<24x1xf32> to vector<1x24x1xf32>
      %cst_31 = arith.constant dense<0.000000e+00> : vector<1xf32>
      %98 = vector.multi_reduction <add>, %97, %cst_31 [1, 2] : vector<1x24x1xf32> to vector<1xf32>
      %99 = vector.shape_cast %98 : vector<1xf32> to vector<1x1x1xf32>
      %100 = vector.extract %99[0, 0, 0] : f32 from vector<1x1x1xf32>
      %101 = arith.divf %100, %88 : f32
      %c1_i32_32 = arith.constant 1 : i32
      %102 = arith.subi %c1_i32_27, %c1_i32_32 : i32
      %103 = vector.broadcast %102 : i32 to vector<1x3xi32>
      %104 = arith.cmpi eq, %49, %103 : vector<1x3xi32>
      %105 = vector.broadcast %101 : f32 to vector<1x3xf32>
      %106 = arith.select %104, %105, %50 : vector<1x3xi1>, vector<1x3xf32>
      %c2_i32 = arith.constant 2 : i32
      %107 = vector.broadcast %c2_i32 : i32 to vector<24x128xi32>
      %108 = arith.cmpi eq, %27, %107 : vector<24x128xi32>
      %109 = vector.broadcast %c2_i32 : i32 to vector<24x128xi32>
      %110 = arith.cmpi eq, %44, %109 : vector<24x128xi32>
      %111 = vector.broadcast %c2_i32 : i32 to vector<24x128xi32>
      %112 = arith.cmpi eq, %28, %111 : vector<24x128xi32>
      %113 = arith.ori %108, %112 : vector<24x128xi1>
      %114 = vector.broadcast %c2_i32 : i32 to vector<24x128xi32>
      %115 = arith.cmpi eq, %29, %114 : vector<24x128xi32>
      %116 = arith.ori %113, %115 : vector<24x128xi1>
      %117 = vector.broadcast %c2_i32 : i32 to vector<24x128xi32>
      %118 = arith.cmpi eq, %30, %117 : vector<24x128xi32>
      %119 = arith.ori %116, %118 : vector<24x128xi1>
      %120 = vector.broadcast %c2_i32 : i32 to vector<24x128xi32>
      %121 = arith.cmpi eq, %31, %120 : vector<24x128xi32>
      %122 = arith.ori %119, %121 : vector<24x128xi1>
      %123 = vector.broadcast %c2_i32 : i32 to vector<24x128xi32>
      %124 = arith.cmpi eq, %45, %123 : vector<24x128xi32>
      %125 = arith.ori %110, %124 : vector<24x128xi1>
      %126 = vector.broadcast %c2_i32 : i32 to vector<24x128xi32>
      %127 = arith.cmpi eq, %46, %126 : vector<24x128xi32>
      %128 = arith.ori %125, %127 : vector<24x128xi1>
      %129 = vector.broadcast %c2_i32 : i32 to vector<24x128xi32>
      %130 = arith.cmpi eq, %47, %129 : vector<24x128xi32>
      %131 = arith.ori %128, %130 : vector<24x128xi1>
      %132 = vector.broadcast %c2_i32 : i32 to vector<24x128xi32>
      %133 = arith.cmpi eq, %48, %132 : vector<24x128xi32>
      %134 = arith.ori %131, %133 : vector<24x128xi1>
      %135 = arith.extui %108 : vector<24x128xi1> to vector<24x128xi32>
      %136 = arith.sitofp %135 : vector<24x128xi32> to vector<24x128xf32>
      %137 = arith.extui %110 : vector<24x128xi1> to vector<24x128xi32>
      %138 = arith.sitofp %137 : vector<24x128xi32> to vector<24x128xf32>
      %139 = arith.addf %136, %138 : vector<24x128xf32>
      %cst_33 = arith.constant dense<0.000000e+00> : vector<24x1xf32>
      %140 = tpu.matmul %139, %14, %cst_33 {dimension_numbers = #tpu.dot_dimension_numbers<[1], [0], [0], [1], [0, 0, 1, 1], [], []>} : vector<24x128xf32>, vector<128x1xf32>, vector<24x1xf32> -> vector<24x1xf32>
      %141 = vector.shape_cast %140 : vector<24x1xf32> to vector<1x24x1xf32>
      %cst_34 = arith.constant dense<0.000000e+00> : vector<1xf32>
      %142 = vector.multi_reduction <add>, %141, %cst_34 [1, 2] : vector<1x24x1xf32> to vector<1xf32>
      %143 = vector.shape_cast %142 : vector<1xf32> to vector<1x1x1xf32>
      %144 = vector.extract %143[0, 0, 0] : f32 from vector<1x1x1xf32>
      %145 = arith.andi %110, %122 : vector<24x128xi1>
      %146 = arith.extui %145 : vector<24x128xi1> to vector<24x128xi32>
      %147 = arith.sitofp %146 : vector<24x128xi32> to vector<24x128xf32>
      %148 = arith.andi %108, %134 : vector<24x128xi1>
      %149 = arith.extui %148 : vector<24x128xi1> to vector<24x128xi32>
      %150 = arith.sitofp %149 : vector<24x128xi32> to vector<24x128xf32>
      %151 = arith.addf %147, %150 : vector<24x128xf32>
      %cst_35 = arith.constant dense<0.000000e+00> : vector<24x1xf32>
      %152 = tpu.matmul %151, %14, %cst_35 {dimension_numbers = #tpu.dot_dimension_numbers<[1], [0], [0], [1], [0, 0, 1, 1], [], []>} : vector<24x128xf32>, vector<128x1xf32>, vector<24x1xf32> -> vector<24x1xf32>
      %153 = vector.shape_cast %152 : vector<24x1xf32> to vector<1x24x1xf32>
      %cst_36 = arith.constant dense<0.000000e+00> : vector<1xf32>
      %154 = vector.multi_reduction <add>, %153, %cst_36 [1, 2] : vector<1x24x1xf32> to vector<1xf32>
      %155 = vector.shape_cast %154 : vector<1xf32> to vector<1x1x1xf32>
      %156 = vector.extract %155[0, 0, 0] : f32 from vector<1x1x1xf32>
      %157 = arith.divf %156, %144 : f32
      %c1_i32_37 = arith.constant 1 : i32
      %158 = arith.subi %c2_i32, %c1_i32_37 : i32
      %159 = vector.broadcast %158 : i32 to vector<1x3xi32>
      %160 = arith.cmpi eq, %49, %159 : vector<1x3xi32>
      %161 = vector.broadcast %157 : f32 to vector<1x3xf32>
      %162 = arith.select %160, %161, %106 : vector<1x3xi1>, vector<1x3xf32>
      %c3_i32_38 = arith.constant 3 : i32
      %163 = vector.broadcast %c3_i32_38 : i32 to vector<24x128xi32>
      %164 = arith.cmpi eq, %27, %163 : vector<24x128xi32>
      %165 = vector.broadcast %c3_i32_38 : i32 to vector<24x128xi32>
      %166 = arith.cmpi eq, %44, %165 : vector<24x128xi32>
      %167 = vector.broadcast %c3_i32_38 : i32 to vector<24x128xi32>
      %168 = arith.cmpi eq, %28, %167 : vector<24x128xi32>
      %169 = arith.ori %164, %168 : vector<24x128xi1>
      %170 = vector.broadcast %c3_i32_38 : i32 to vector<24x128xi32>
      %171 = arith.cmpi eq, %29, %170 : vector<24x128xi32>
      %172 = arith.ori %169, %171 : vector<24x128xi1>
      %173 = vector.broadcast %c3_i32_38 : i32 to vector<24x128xi32>
      %174 = arith.cmpi eq, %30, %173 : vector<24x128xi32>
      %175 = arith.ori %172, %174 : vector<24x128xi1>
      %176 = vector.broadcast %c3_i32_38 : i32 to vector<24x128xi32>
      %177 = arith.cmpi eq, %31, %176 : vector<24x128xi32>
      %178 = arith.ori %175, %177 : vector<24x128xi1>
      %179 = vector.broadcast %c3_i32_38 : i32 to vector<24x128xi32>
      %180 = arith.cmpi eq, %45, %179 : vector<24x128xi32>
      %181 = arith.ori %166, %180 : vector<24x128xi1>
      %182 = vector.broadcast %c3_i32_38 : i32 to vector<24x128xi32>
      %183 = arith.cmpi eq, %46, %182 : vector<24x128xi32>
      %184 = arith.ori %181, %183 : vector<24x128xi1>
      %185 = vector.broadcast %c3_i32_38 : i32 to vector<24x128xi32>
      %186 = arith.cmpi eq, %47, %185 : vector<24x128xi32>
      %187 = arith.ori %184, %186 : vector<24x128xi1>
      %188 = vector.broadcast %c3_i32_38 : i32 to vector<24x128xi32>
      %189 = arith.cmpi eq, %48, %188 : vector<24x128xi32>
      %190 = arith.ori %187, %189 : vector<24x128xi1>
      %191 = arith.extui %164 : vector<24x128xi1> to vector<24x128xi32>
      %192 = arith.sitofp %191 : vector<24x128xi32> to vector<24x128xf32>
      %193 = arith.extui %166 : vector<24x128xi1> to vector<24x128xi32>
      %194 = arith.sitofp %193 : vector<24x128xi32> to vector<24x128xf32>
      %195 = arith.addf %192, %194 : vector<24x128xf32>
      %cst_39 = arith.constant dense<0.000000e+00> : vector<24x1xf32>
      %196 = tpu.matmul %195, %14, %cst_39 {dimension_numbers = #tpu.dot_dimension_numbers<[1], [0], [0], [1], [0, 0, 1, 1], [], []>} : vector<24x128xf32>, vector<128x1xf32>, vector<24x1xf32> -> vector<24x1xf32>
      %197 = vector.shape_cast %196 : vector<24x1xf32> to vector<1x24x1xf32>
      %cst_40 = arith.constant dense<0.000000e+00> : vector<1xf32>
      %198 = vector.multi_reduction <add>, %197, %cst_40 [1, 2] : vector<1x24x1xf32> to vector<1xf32>
      %199 = vector.shape_cast %198 : vector<1xf32> to vector<1x1x1xf32>
      %200 = vector.extract %199[0, 0, 0] : f32 from vector<1x1x1xf32>
      %201 = arith.andi %166, %178 : vector<24x128xi1>
      %202 = arith.extui %201 : vector<24x128xi1> to vector<24x128xi32>
      %203 = arith.sitofp %202 : vector<24x128xi32> to vector<24x128xf32>
      %204 = arith.andi %164, %190 : vector<24x128xi1>
      %205 = arith.extui %204 : vector<24x128xi1> to vector<24x128xi32>
      %206 = arith.sitofp %205 : vector<24x128xi32> to vector<24x128xf32>
      %207 = arith.addf %203, %206 : vector<24x128xf32>
      %cst_41 = arith.constant dense<0.000000e+00> : vector<24x1xf32>
      %208 = tpu.matmul %207, %14, %cst_41 {dimension_numbers = #tpu.dot_dimension_numbers<[1], [0], [0], [1], [0, 0, 1, 1], [], []>} : vector<24x128xf32>, vector<128x1xf32>, vector<24x1xf32> -> vector<24x1xf32>
      %209 = vector.shape_cast %208 : vector<24x1xf32> to vector<1x24x1xf32>
      %cst_42 = arith.constant dense<0.000000e+00> : vector<1xf32>
      %210 = vector.multi_reduction <add>, %209, %cst_42 [1, 2] : vector<1x24x1xf32> to vector<1xf32>
      %211 = vector.shape_cast %210 : vector<1xf32> to vector<1x1x1xf32>
      %212 = vector.extract %211[0, 0, 0] : f32 from vector<1x1x1xf32>
      %213 = arith.divf %212, %200 : f32
      %c1_i32_43 = arith.constant 1 : i32
      %214 = arith.subi %c3_i32_38, %c1_i32_43 : i32
      %215 = vector.broadcast %214 : i32 to vector<1x3xi32>
      %216 = arith.cmpi eq, %49, %215 : vector<1x3xi32>
      %217 = vector.broadcast %213 : f32 to vector<1x3xf32>
      %218 = arith.select %216, %217, %162 : vector<1x3xi1>, vector<1x3xf32>
      %c3_i32_44 = arith.constant 3 : i32
      %c0_45 = arith.constant 0 : index
      %c0_46 = arith.constant 0 : index
      %c0_47 = arith.constant 0 : index
      %219 = vector.load %arg4[%c0_45, %c0_46, %c0_47] : memref<1x1x3xf32, #tpu.memory_space<vmem>>, vector<1x1x3xf32>
      %220 = vector.shape_cast %219 : vector<1x1x3xf32> to vector<1x3xf32>
      %221 = vector.shape_cast %218 : vector<1x3xf32> to vector<1x1x3xf32>
      tpu.vector_store %arg4[%c0_45, %c0_46, %c0_47], %221 {strides = array<i32>} : memref<1x1x3xf32, #tpu.memory_space<vmem>>, vector<1x1x3xf32>,
    } else {
    }
    return
  }
  func.func @transform_0(%arg0: i32, %arg1: i32) -> (i32, i32, i32, i32) {
    %c0_i32 = arith.constant 0 : i32
    %c0_i32_0 = arith.constant 0 : i32
    %c0_i32_1 = arith.constant 0 : i32
    return %arg0, %arg1, %c0_i32, %c0_i32_0 : i32, i32, i32, i32
  }
  func.func @transform_1(%arg0: i32, %arg1: i32) -> (i32, i32, i32) {
    %c0_i32 = arith.constant 0 : i32
    %c0_i32_0 = arith.constant 0 : i32
    %c0_i32_1 = arith.constant 0 : i32
    return %arg0, %c0_i32, %c0_i32_0 : i32, i32, i32
  }
  func.func @transform_2(%arg0: i32, %arg1: i32) -> (i32, i32, i32) {
    %c0_i32 = arith.constant 0 : i32
    %c0_i32_0 = arith.constant 0 : i32
    %c0_i32_1 = arith.constant 0 : i32
    return %arg0, %c0_i32, %c0_i32_0 : i32, i32, i32
  }
}

</mosaic_0001>

<bundles_post_ra>
// kernel: tpu_custom_call.1
= control target key start
LH: loop header
LB: loop body
LE: loop exit
PB: predicated region body
PF: predicated region fallthrough
CT: control target
= control target key end

     0   :  { %s3311_s0 = inlined_call_operand.hbm [shape: f32[2,4,24,128], index: 0, kind: input, shape index: {}]   ;;  %s3312_s1 = inlined_call_operand.hbm [shape: s32[2,24,128], index: 1, kind: input, shape index: {}]   ;;  %s3313_s2 = inlined_call_operand.hbm [shape: f32[2,1,3], index: 2, kind: output, shape index: {}]  }
   0x1   :  { %3340 = sst [smem:[#allocation17_spill]] %s3311_s0 }
   0x2   :  { %7 = vsyncpa [#allocation5], 0 }
   0x3   :  { %9 = vsyncpa [#allocation5 + $0x1], 0 }
   0x4   :  { %10 = vsyncpa [#allocation8], 0 }
   0x5   :  { %12 = vsyncpa [#allocation8 + $0x1], 0 }
   0x6   :  { %13 = vsyncpa [#allocation6], 0 }
   0x7   :  { %15 = vsyncpa [#allocation6 + $0x1], 0  ;;  %s2153_s9 = smov 0   ;;  %s2155_s10 = smov 0  }
   0x8   :  { %s2157_s11 = smov 0   ;;  %s2159_s12 = smov 0  }
   0x9   :  { %s2161_s13 = smov 0   ;;  %s2163_s14 = smov 0  }
   0xa   :  { %s2165_s15 = smov 0   ;;  %s2167_s16 = smov 0  }
   0xb   :  { %s2169_s17 = smov 0   ;;  %s2171_s18 = smov 0  }
   0xc   :  { %s2173_s19 = smov 0  }
   0xd LB: > { %3341 = sst [smem:[#allocation13_spill]] %s2117_s17  ;;  %s3314_s20 = sadd.s32 4294967295, %s2125_s19   ;;  %s2125_s19 = sphi %s2173_s19, %s21_s19   ;;  %s2121_s18 = sphi %s2171_s18, %s3493_s18   ;;  %s2117_s17 = sphi %s2169_s17, %s3492_s17   ;;  %s2113_s16 = sphi %s2167_s16, %s3491_s16   ;;  %s2109_s15 = sphi %s2165_s15, %s3490_s15   ;;  %s2105_s14 = sphi %s2163_s14, %s3499_s14   ;;  %s2101_s13 = sphi %s2161_s13, %s3498_s13   ;;  %s2097_s12 = sphi %s2159_s12, %s3497_s12   ;;  %s2093_s11 = sphi %s2157_s11, %s3496_s11   ;;  %s2089_s10 = sphi %s2155_s10, %s3495_s10   ;;  %s2085_s9 = sphi %s2153_s9, %s3494_s9  }
   0xe   : > { %3342 = sst [smem:[#allocation14_spill]] %s2121_s18  ;;  %s30_s21 = sadd.s32 1, %s2117_s17 }
   0xf   : > { %p31_p0 = scmp.ge.s32.totalorder %s30_s21, 4  ;;  %s33_s22 = sadd.s32 1, %s2121_s18 }
  0x10   : > { %s42_s23 = sadd.s32 1, %s2105_s14  ;;  %p49_p1 = scmp.ne.s32.totalorder %s2105_s14, %s2101_s13 }
  0x11   : > { %s3501_s21 = smov (%p31_p0, %s30_s21), 0  ;;  %s3503_s22 = smov (!%p31_p0, %s33_s22), %s2121_s18 }
  0x12   : > { %3343 = sst [smem:[#allocation15_spill]] %s3501_s21  ;;  %s38_s24 = ssub.s32 %s2117_s17, %s3501_s21 }
  0x13   : > { %p50_p2 = scmp.eq.s32.totalorder %s2125_s19, 0  ;;  %p35_p3 = scmp.ge.s32.totalorder %s3503_s22, 2 }
  0x14   : > { %p55_p4 = scmp.ne.s32.totalorder %s2101_s13, %s2097_s12  ;;  %p2227_p6 = scmp.eq.s32.totalorder %s3314_s20, 0 }
  0x15   : > { %p2221_p5 = por %p50_p2, %p49_p1  ;;  %s3505_s22 = smov (%p35_p3, %s3503_s22), 0 }
  0x16   : > { %3346 = sst [smem:[#allocation16_spill]] %s3505_s22  ;;  %p2235_p7 = por %p2227_p6, %p55_p4 }
  0x17   : > { %s2241_s28 = ssub.s32 %s2121_s18, %s3505_s22  ;;  %p1841_p8 = scmp.lt.s32.totalorder %s2125_s19, 8 }
  0x18   : > { %s39_s29 = sor.u32 %s38_s24, %s2241_s28  ;;  %p66_p9 = scmp.eq.s32.totalorder %s2241_s28, 0 }
  0x19   : > { %p40_p10 = scmp.eq.s32.totalorder %s39_s29, 0  ;;  %s131_s30 = sand.u32 1, %s2105_s14  }
  0x1a   : > { %s1799_s3 = smul.u32 24, %s131_s30  ;;  %p2256_p11 = pnand %p1841_p8, %p2221_p5 }
  0x1b   : > { %s2248_s4 = scalar_select %p40_p10, %s2105_s14, %s42_s23  }
  0x1c   : > { %s1800_s5 = smul.u32 3, %s2117_s17  ;;  %s135_s7 = scalar_lea.vmem [#allocation4], %s1799_s3 }
  0x1d   : > { %s1801_s6 = smul.u32 12, %s2121_s18  ;;  %s144_s8 = sshll.u32 %s135_s7, 4  ;;  %s145_s8 = int_to_ptr.vmem [resolvable:$true] %s144_s8 }
  0x1e   : > { %s3349_s0 = sld [smem:[#allocation17_spill]]  ;;  %s132_s23 = scalar_lea.sflag [#allocation5], %s131_s30 }
  0x1f   : > { %s141_s20 = sadd.s32 %s1801_s6, %s1800_s5  ;;  %p1947_p12 = pneg %p2256_p11 }
  0x20   : > { %s1394_s24 = sshll.u32 %s141_s20, 7  ;;  %s1958_s17 = scalar_lea.vmem %s145_s8, 384 }
  0x21   : > { %p1959_p13 = scmp.ne.s32.totalorder %s145_s8, %s1958_s17  ;;  %s2127_s25 = smov [#allocation4]  }
  0x22   : > { %s1963_s3 = sshll.u32 %s2127_s25, 4  ;;  %s1964_s3 = int_to_ptr.vmem [resolvable:$false] %s1963_s3 }
  0x23   : > { %p1961_p0 = pnand %p1959_p13, %p1947_p12  ;;  %s1965_s7 = scalar_lea.vmem %s1964_s3, 768 }
  0x24   : > { %s143_s21 = scalar_lea.hbm %s3349_s0, %s1394_s24  ;;  %p1966_p3 = scmp.lt.s32.totalorder %s145_s8, %s1964_s3 }
  0x25   : > { %p1962_p1 = pneg %p1961_p0  ;;  %p1967_p4 = scmp.lt.s32.totalorder %s1965_s7, %s1958_s17 }
  0x27   : > { %p1968_p5 = por %p1967_p4, %p1966_p3 }
  0x29   : > { %p1969_p10 = pnand %p1968_p5, %p1962_p1 }
  0x2b   : > { %1972 = shalt.err (!%p1969_p10)
}
  0x2c   : > { %s3318_s20 = smov 128   ;;  %s3319_s17 = smov 8  }
  0x2d   : > { %1833 = dma.hbm_to_vmem [thread:$0]  (!%p2256_p11), %s143_s21, 384, %s145_s8, %s132_s23, %s3318_s20, %s3318_s20, %s3319_s17  }
  0x2e   : > { %p1396_p12 = scmp.ge.s32.totalorder %s2125_s19, 1  ;;  %p173_p13 = scmp.lt.s32.totalorder %s2125_s19, 9 }
  0x2f   : > { %s1391_s30 = sadd.s32 4294967294, %s2125_s19   ;;  %s68_s5 = sadd.s32 1, %s2093_s11 }
  0x30   : > { %p2272_p0 = pnand %p1396_p12, %p173_p13  ;;  %p75_p1 = scmp.ne.s32.totalorder %s2093_s11, %s2089_s10 }
  0x31   : > { %s2283_s6 = scalar_select %p66_p9, %s2093_s11, %s68_s5  }
  0x32   : > { %p77_p3 = por %p75_p1, %p50_p2  ;;  %p81_p4 = scmp.ne.s32.totalorder %s2089_s10, %s2085_s9 }
  0x33   : > { %s3351_s12 = sadd.s32 4294967295, %s2125_s19   ;;  %p111_p11 = scmp.eq.s32.totalorder %s1391_s30, 7 }
  0x34   : > { %p105_p5 = scmp.eq.s32.totalorder %s3351_s12, 7  ;;  %p2293_p10 = por %p81_p4, %p2227_p6 }
  0x35   : > { %s154_s8 = sand.u32 1, %s2093_s11   ;;  %p2302_p13 = por %p111_p11, %p81_p4 }
  0x36   : > { %p2298_p12 = por %p105_p5, %p75_p1  ;;  %s1802_s29 = smul.u32 24, %s154_s8 }
  0x37   : > { %s1803_s23 = smul.u32 384, %s2121_s18  ;;  %p2309_p2 = pnand %p1841_p8, %p77_p3 }
  0x38   : > { %s158_s30 = scalar_lea.vmem [#allocation7], %s1802_s29  ;;  %s155_s12 = scalar_lea.sflag [#allocation8], %s154_s8 }
  0x39   : > { %s164_s7 = scalar_lea.hbm %s3312_s1, %s1803_s23  ;;  %s165_s5 = sshll.u32 %s158_s30, 4  ;;  %s166_s5 = int_to_ptr.vmem [resolvable:$true] %s165_s5 }
  0x3a   : > { %p1975_p6 = pneg %p2309_p2  ;;  %s1986_s20 = scalar_lea.vmem %s166_s5, 384 }
  0x3b   : > { %p1987_p9 = scmp.ne.s32.totalorder %s166_s5, %s1986_s20  ;;  %s2130_s17 = smov [#allocation7]  }
  0x3c   : > { %s1991_s0 = sshll.u32 %s2130_s17, 4  ;;  %s1992_s0 = int_to_ptr.vmem [resolvable:$false] %s1991_s0 }
  0x3d   : > { %p1989_p1 = pnand %p1987_p9, %p1975_p6  ;;  %s1993_s18 = scalar_lea.vmem %s1992_s0, 768 }
  0x3e   : > { %p1994_p8 = scmp.lt.s32.totalorder %s166_s5, %s1992_s0  ;;  %p1995_p3 = scmp.lt.s32.totalorder %s1993_s18, %s1986_s20 }
  0x3f   : > { %p1990_p4 = pneg %p1989_p1 }
  0x40   : > { %p1996_p5 = por %p1995_p3, %p1994_p8 }
  0x42   : > { %p1997_p11 = pnand %p1996_p5, %p1990_p4 }
  0x44   : > { %2000 = shalt.err (!%p1997_p11)
}
  0x45   : > { %s3356_s29 = smov 8   ;;  %s3357_s23 = smov 128  }
  0x46   : > { %1836 = dma.hbm_to_vmem [thread:$0]  (!%p2309_p2), %s164_s7, 384, %s166_s5, %s155_s12, %s3357_s23, %s3357_s23, %s3356_s29  }
  0x47   : > { %177 = sbr.rel (%p2272_p0) target bundleno = 959 (0x3bf), region = 28  ;;  %s179_s8 = sand.u32 (!%p2272_p0), 1, %s2101_s13  }
  0x48   : > { %s1804_s17 = smul.u32 (!%p2272_p0), 24, %s179_s8  ;;  %s180_s26 = scalar_lea.sflag (!%p2272_p0), [#allocation5], %s179_s8 }
  0x4a   : > { %s183_s3 = scalar_lea.vmem (!%p2272_p0), [#allocation4], %s1804_s17 }
  0x4c   : > { %2072 = dma.done.wait (%p2235_p7), %s180_s26, 384  }
  0x4d   : > { %2074 = vsyncadd (%p2235_p7), %s180_s26, 4294966912  ;;  %s2331_s0 = sand.u32 1, %s2089_s10  }
  0x4e   : > { %s1805_s18 = smul.u32 24, %s2331_s0  ;;  %s189_s20 = scalar_lea.sflag [#allocation8], %s2331_s0 }
  0x50   : > { %s2335_s22 = scalar_lea.vmem [#allocation7], %s1805_s18 }
  0x51   : > { %2076 = dma.done.wait (%p2293_p10), %s189_s20, 384  }
  0x52   : > { %2078 = vsyncadd (%p2293_p10), %s189_s20, 4294966912  ;;  %v217_v0 = vld [vmem:[%s183_s3] sm:$0xff]  ;;  %v218_v1 = vld [vmem:[%s183_s3 + $0x8] sm:$0xff]  ;;  %s216_s27 = scalar_lea.vmem [#allocation9], %s2331_s0  ;;  %p1397_p7 = scmp.ne.s32.totalorder %s2109_s15, 0 }
  0x53   : > { %v219_v2 = vld [vmem:[%s183_s3 + $0x10] sm:$0xff] }
  0x54   : > { %223 = sbr.rel (%p1397_p7) target bundleno = 92 (0x5c), region = 40 }
  0x59   : > { %224 = vst [vmem:[#allocation2 + $0x10] sm:$0xff] %v217_v0  ;;  %225 = vst [vmem:[#allocation2] sm:$0xff] %v218_v1  ;;  %v2131_v3 = vmov 0  }
  0x5a   : > { %226 = vst [vmem:[#allocation2 + $0x8] sm:$0xff] %v219_v2  ;;  %227 = vst [vmem:[#allocation3 + $0x8] sm:$0xff] %v2131_v3 }
  0x5b   : > { %228 = vst [vmem:[#allocation3] sm:$0xff] %v2131_v3  ;;  %229 = vst [vmem:[#allocation3 + $0x10] sm:$0xff] %v2131_v3 }
  0x5c PF: > { %p1398_p0 = scmp.le.s32.totalorder %s2109_s15, 0 }
  0x5e   : > { %233 = sbr.rel (%p1398_p0) target bundleno = 105 (0x69), region = 44 }
  0x63   : > { %v234_v4 = vld [vmem:[#allocation2 + $0x10] sm:$0xff]  ;;  %v235_v5 = vld [vmem:[#allocation2] sm:$0xff]  ;;  %v236_v6 = vld [vmem:[#allocation2 + $0x8] sm:$0xff]  ;;  %v249_v7 = vstv %s2109_s15 }
  0x64   : > { %vm237_vm0 = vcmp.gt.f32.partialorder %v217_v0, %v234_v4  ;;  %vm238_vm1 = vcmp.gt.f32.partialorder %v218_v1, %v235_v5  ;;  %vm239_vm2 = vcmp.gt.f32.partialorder %v219_v2, %v236_v6  ;;  %v246_v8 = vld [vmem:[#allocation3 + $0x8] sm:$0xff]  ;;  %v247_v9 = vld [vmem:[#allocation3] sm:$0xff]  ;;  %v248_v10 = vld [vmem:[#allocation3 + $0x10] sm:$0xff] }
  0x65   : > { %v240_v11 = vsel %vm237_vm0, %v217_v0, %v234_v4  ;;  %v241_v12 = vsel %vm238_vm1, %v218_v1, %v235_v5  ;;  %v242_v13 = vsel %vm239_vm2, %v219_v2, %v236_v6  ;;  %v250_v14 = vsel %vm237_vm0, %v249_v7, %v246_v8 }
  0x66   : > { %243 = vst [vmem:[#allocation2 + $0x10] sm:$0xff] %v240_v11  ;;  %244 = vst [vmem:[#allocation2] sm:$0xff] %v241_v12  ;;  %v251_v15 = vsel %vm238_vm1, %v249_v7, %v247_v9  ;;  %v252_v16 = vsel %vm239_vm2, %v249_v7, %v248_v10 }
  0x67   : > { %245 = vst [vmem:[#allocation2 + $0x8] sm:$0xff] %v242_v13  ;;  %253 = vst [vmem:[#allocation3 + $0x8] sm:$0xff] %v250_v14 }
  0x68   : > { %254 = vst [vmem:[#allocation3] sm:$0xff] %v251_v15  ;;  %255 = vst [vmem:[#allocation3 + $0x10] sm:$0xff] %v252_v16 }
  0x69 PF: > { %p1399_p10 = scmp.ne.s32.totalorder %s2109_s15, 3 }
  0x6a   : > { %s2132_s21 = smov (!%p1399_p10), 127   ;;  %s2133_s25 = smov (!%p1399_p10), 1  }
  0x6b   : > { %259 = sbr.rel (%p1399_p10) target bundleno = 936 (0x3a8), region = 48 }
  0x70   : > { %v2346_v17 = vld [vmem:[#allocation3 + $0x8] sm:$0xff]  ;;  %v2134_v19 = vmov 0.0   ;;  %v2135_v20 = vmov 1.0   ;;  %v2368_v22 = vld [vmem:[#allocation3] sm:$0xff]  ;;  %vm3327_vm3 = vmmov 0   ;;  %v2389_v23 = vld [vmem:[%s2335_s22 + $0x10] sm:$0xff]  ;;  %v269_v25 = vlaneseq }
  0x71   : > { %303 = vrot.lane.b32.xlu1 %v2346_v17, %s2132_s21  ;;  %291 = vrot.lane.b32.xlu0 %v2346_v17, %s2133_s25  ;;  %v2353_v18 = vld [vmem:[%s2335_s22] sm:$0xff]  ;;  %v2366_v21 = vld [vmem:[%s2335_s22 + $0x8] sm:$0xff]  ;;  %v279_v28 = vrot.slane %v2368_v22, 1  ;;  %v266_v29 = vrot.slane %v2346_v17, 7  ;;  %v278_v30 = vrot.slane %v2346_v17, 1  ;;  %v344_v32 = vrot.slane %v2389_v23, 7 }
  0x72   : > { %1553 = vmatprep.subr.mxu0 %v2134_v19  ;;  %1594 = vmatprep.subr.mxu1 %v2134_v19  ;;  %v2391_v24 = vld [vmem:[#allocation3 + $0x10] sm:$0xff]  ;;  %v2456_v26 = vshrl.u32 %v269_v25, 7  ;;  %v342_v31 = vrot.slane %v2353_v18, 7  ;;  %v351_v33 = vrot.slane %v2353_v18, 1  ;;  %v352_v34 = vrot.slane %v2366_v21, 1 }
  0x73   : > { %1554 = vmatpush3.msra.mxu0 %v2135_v20  ;;  %1595 = vmatpush3.msra.mxu1 %v2135_v20  ;;  %v268_v27 = vrot.slane %v2391_v24, 7  ;;  %v343_v39 = vrot.slane %v2366_v21, 7  ;;  %v353_v40 = vrot.slane %v2389_v23, 1  ;;  %v267_v43 = vrot.slane %v2368_v22, 7 }
  0x74   : > { %1555 = vmatprep.subr.mxu0 %v2134_v19  ;;  %1596 = vmatprep.subr.mxu1 %v2134_v19  ;;  %vm271_vm4 = vcmp.lt.s32.totalorder %v2456_v26, 1  ;;  %vm281_vm5 = vcmp.lt.s32.totalorder %v2456_v26, 7  ;;  %v280_v44 = vrot.slane %v2391_v24, 1  ;;  %v3398_v5 = vmov 0 }
  0x75   : > { %375 = vrot.lane.b32.xlu1 %v2353_v18, %s2132_s21  ;;  %363 = vrot.lane.b32.xlu0 %v2353_v18, %s2133_s25  ;;  %v274_v35 = vsel %vm271_vm4, %v268_v27, %v266_v29  ;;  %v283_v36 = vsel %vm281_vm5, %v278_v30, %v279_v28  ;;  %v347_v37 = vsel %vm271_vm4, %v344_v32, %v342_v31 }
  0x76   : > { %1556 = vmatpush3.msra.mxu0 %v2135_v20  ;;  %1585 = vmatprep.mubr.msk.f32.mxu0 %vm3327_vm3, %v2134_v19  ;;  %v355_v38 = vsel %vm281_vm5, %v351_v33, %v352_v34  ;;  %vm275_vm6 = vcmp.ne.s32.totalorder %v274_v35, %v2346_v17  ;;  %vm285_vm7 = vcmp.ne.s32.totalorder %v283_v36, %v2346_v17 }
  0x77   : > { %1557 = vmatprep.subr.mxu0 %v2134_v19  ;;  %1597 = vmatpush3.msra.mxu1 %v2135_v20  ;;  %vm348_vm8 = vcmp.ne.s32.totalorder %v347_v37, %v2353_v18  ;;  %vm357_vm9 = vcmp.ne.s32.totalorder %v355_v38, %v2353_v18  ;;  %vm288_vm10 = vmor %vm275_vm6, %vm285_vm7  ;;  %v346_v45 = vsel %vm271_vm4, %v342_v31, %v343_v39 }
  0x78   : > { %1558 = vmatpush3.msra.mxu0 %v2135_v20  ;;  %1598 = vmatprep.subr.mxu1 %v2134_v19  ;;  %vm360_vm13 = vmor %vm348_vm8, %vm357_vm9  ;;  %v354_v46 = vsel %vm281_vm5, %v352_v34, %v353_v40  ;;  %v282_v50 = vsel %vm281_vm5, %v279_v28, %v280_v44  ;;  %v273_v51 = vsel %vm271_vm4, %v266_v29, %v267_v43 }
  0x79   : > { %365 = vrot.lane.b32.xlu1 %v2366_v21, %s2133_s25  ;;  %293 = vrot.lane.b32.xlu0 %v2368_v22, %s2133_s25  ;;  %vm349_vm6 = vcmp.ne.s32.totalorder %v346_v45, %v2366_v21  ;;  %vm358_vm7 = vcmp.ne.s32.totalorder %v354_v46, %v2366_v21  ;;  %vm286_vm9 = vcmp.ne.s32.totalorder %v282_v50, %v2368_v22  ;;  %v3366_v45 = vmov 0 }
  0x7a   : > { %1559 = vmatprep.subr.mxu0 %v2134_v19  ;;  %1599 = vmatpush3.msra.mxu1 %v2135_v20  ;;  %v345_v58 = vsel %vm271_vm4, %v343_v39, %v344_v32  ;;  %v356_v59 = vsel %vm281_vm5, %v353_v40, %v351_v33  ;;  %v272_v62 = vsel %vm271_vm4, %v267_v43, %v268_v27 }
  0x7b   : > { %1560 = vmatpush3.msra.mxu0 %v2135_v20  ;;  %1600 = vmatprep.subr.mxu1 %v2134_v19  ;;  %v284_v63 = vsel %vm281_vm5, %v280_v44, %v278_v30 }
  0x7c   : > { %1561 = vmatprep.subr.mxu0 %v2134_v19  ;;  %1601 = vmatpush3.msra.mxu1 %v2135_v20 }
  0x7d   : > { %377 = vrot.lane.b32.xlu1 %v2366_v21, %s2132_s21  ;;  %305 = vrot.lane.b32.xlu0 %v2368_v22, %s2132_s21 }
  0x7e   : > { %1562 = vmatpush3.msra.mxu0 %v2135_v20  ;;  %1602 = vmatprep.subr.mxu1 %v2134_v19 }
  0x7f   : > { %1563 = vmatprep.subr.mxu0 %v2134_v19  ;;  %1603 = vmatpush3.msra.mxu1 %v2135_v20 }
  0x80   : > { %1564 = vmatpush3.msra.mxu0 %v2135_v20  ;;  %1604 = vmatprep.subr.mxu1 %v2134_v19 }
  0x81   : > { %367 = vrot.lane.b32.xlu1 %v2389_v23, %s2133_s25  ;;  %295 = vrot.lane.b32.xlu0 %v2391_v24, %s2133_s25 }
  0x82   : > { %1565 = vmatprep.subr.mxu0 %v2134_v19  ;;  %1605 = vmatpush3.msra.mxu1 %v2135_v20 }
  0x83   : > { %1566 = vmatpush3.msra.mxu0 %v2135_v20  ;;  %1606 = vmatprep.subr.mxu1 %v2134_v19 }
  0x84   : > { %1567 = vmatprep.subr.mxu0 %v2134_v19  ;;  %1607 = vmatpush3.msra.mxu1 %v2135_v20 }
  0x85   : > { %379 = vrot.lane.b32.xlu1 %v2389_v23, %s2132_s21  ;;  %307 = vrot.lane.b32.xlu0 %v2391_v24, %s2132_s21 }
  0x86   : > { %1568 = vmatpush3.msra.mxu0 %v2135_v20  ;;  %1608 = vmatprep.subr.mxu1 %v2134_v19 }
  0x87   : > { %1569 = vmatprep.subr.mxu0 %v2134_v19  ;;  %1609 = vmatpush3.msra.mxu1 %v2135_v20 }
  0x88   : > { %1570 = vmatpush3.msra.mxu0 %v2135_v20  ;;  %1610 = vmatprep.subr.mxu1 %v2134_v19 }
  0x89   : > { %1571 = vmatprep.subr.mxu0 %v2134_v19  ;;  %1611 = vmatpush3.msra.mxu1 %v2135_v20 }
  0x8a   : > { %1572 = vmatpush3.msra.mxu0 %v2135_v20  ;;  %1612 = vmatprep.subr.mxu1 %v2134_v19 }
  0x8b   : > { %1573 = vmatprep.subr.mxu0 %v2134_v19  ;;  %1613 = vmatpush3.msra.mxu1 %v2135_v20 }
  0x8c   : > { %1574 = vmatpush3.msra.mxu0 %v2135_v20  ;;  %1614 = vmatprep.subr.mxu1 %v2134_v19 }
  0x8d   : > { %1575 = vmatprep.subr.mxu0 %v2134_v19  ;;  %1615 = vmatpush3.msra.mxu1 %v2135_v20 }
  0x8e   : > { %1576 = vmatpush3.msra.mxu0 %v2135_v20  ;;  %1616 = vmatprep.subr.mxu1 %v2134_v19 }
  0x8f   : > { %1577 = vmatprep.subr.mxu0 %v2134_v19  ;;  %1617 = vmatpush3.msra.mxu1 %v2135_v20 }
  0x90   : > { %1578 = vmatpush3.msra.mxu0 %v2135_v20  ;;  %1618 = vmatprep.subr.mxu1 %v2134_v19 }
  0x91   : > { %1579 = vmatprep.subr.mxu0 %v2134_v19  ;;  %1619 = vmatpush3.msra.mxu1 %v2135_v20 }
  0x92   : > { %1580 = vmatpush3.msra.mxu0 %v2135_v20  ;;  %1620 = vmatprep.subr.mxu1 %v2134_v19 }
  0x93   : > { %1581 = vmatprep.subr.mxu0 %v2134_v19  ;;  %1621 = vmatpush3.msra.mxu1 %v2135_v20 }
  0x94   : > { %1582 = vmatpush3.msra.mxu0 %v2135_v20  ;;  %1622 = vmatprep.subr.mxu1 %v2134_v19 }
  0x95   : > { %1583 = vmatprep.subr.mxu0 %v2134_v19  ;;  %1623 = vmatpush3.msra.mxu1 %v2135_v20 }
  0x96   : > { %1584 = vmatpush3.msra.mxu0 %v2135_v20  ;;  %1626 = vmatprep.mubr.msk.f32.mxu1 %vm3327_vm3, %v2134_v19 }
  0x97   : > { %1635 = vmatprep.subr.mxu0 %v2134_v19  ;;  %1624 = vmatprep.subr.mxu1 %v2134_v19 }
  0x98   : > { %1625 = vmatpush3.msra.mxu1 %v2135_v20 }
  0x99   : > { %1676 = vmatprep.subr.mxu1 %v2134_v19 }
  0xe3   : > { %v304_v41 = vpop.permute.xlu1 %303  ;;  %v292_v42 = vpop.permute.xlu0 %291 }
  0xe4   : > { %vm309_vm11 = vcmp.ne.s32.totalorder %v304_v41, %v2346_v17  ;;  %vm297_vm12 = vcmp.ne.s32.totalorder %v292_v42, %v2346_v17 }
  0xe5   : > { %vm300_vm14 = vmor %vm288_vm10, %vm297_vm12  ;;  %vm276_vm10 = vcmp.ne.s32.totalorder %v273_v51, %v2368_v22 }
  0xe6   : > { %vm312_vm15 = vmor %vm300_vm14, %vm309_vm11 }
  0xe7   : > { %v2495_v47 = vsel %vm312_vm15, %v2346_v17, 4294967295  ;;  %v376_v48 = vpop.permute.xlu1 %375  ;;  %v364_v49 = vpop.permute.xlu0 %363  ;;  %vm361_vm12 = vmor %vm349_vm6, %vm358_vm7 }
  0xe8   : > { %vm381_vm0 = vcmp.ne.s32.totalorder %v376_v48, %v2353_v18  ;;  %vm369_vm1 = vcmp.ne.s32.totalorder %v364_v49, %v2353_v18  ;;  %330 = vrot.lane.b32.xlu0 %v2495_v47, %s2133_s25  ;;  %vm3321_vm11 = vcmp.eq.s32.totalorder %v2495_v47, 1  ;;  %vm289_vm15 = vmor %vm276_vm10, %vm286_vm9  ;;  %vm350_vm9 = vcmp.ne.s32.totalorder %v345_v58, %v2389_v23 }
  0xe9   : > { %vm372_vm2 = vmor %vm360_vm13, %vm369_vm1  ;;  %v1400_v55 = vsel %vm3321_vm11, 1.0, %v2134_v19  ;;  %vm359_vm10 = vcmp.ne.s32.totalorder %v356_v59, %v2389_v23  ;;  %v324_v10 = vrot.slane %v2495_v47, 1  ;;  %v318_v27 = vrot.slane %v2495_v47, 7 }
  0xea   : > { %vm384_vm8 = vmor %vm372_vm2, %vm381_vm0  ;;  %v3368_v48 = vmov 0  ;;  %v3370_v49 = vmov 0  ;;  %v3380_v58 = vmov 0 }
  0xeb   : > { %v2511_v52 = vsel %vm384_vm8, %v2353_v18, 4294967295  ;;  %v366_v53 = vpop.permute.xlu1 %365  ;;  %v294_v54 = vpop.permute.xlu0 %293 }
  0xec   : > { %vm370_vm14 = vcmp.ne.s32.totalorder %v366_v53, %v2366_v21  ;;  %402 = vrot.lane.b32.xlu1 %v2511_v52, %s2133_s25  ;;  %336 = vrot.lane.b32.xlu0 %v2495_v47, %s2132_s21  ;;  %vm3326_vm13 = vcmp.eq.s32.totalorder %v2511_v52, 1  ;;  %vm298_vm0 = vcmp.ne.s32.totalorder %v294_v54, %v2368_v22  ;;  %v396_v13 = vrot.slane %v2511_v52, 1 }
  0xed   : > { %v1403_v56 = vsel %vm3326_vm13, 1.0, %v2134_v19  ;;  %vm373_vm1 = vmor %vm361_vm12, %vm370_vm14  ;;  %vm277_vm14 = vcmp.ne.s32.totalorder %v272_v62, %v2391_v24  ;;  %v390_v29 = vrot.slane %v2511_v52, 7  ;;  %v3374_v53 = vmov 0 }
  0xee   : > { %v482_v57 = vadd.f32 %v1403_v56, %v1400_v55  ;;  %vm301_vm2 = vmor %vm289_vm15, %vm298_vm0  ;;  %vm287_vm15 = vcmp.ne.s32.totalorder %v284_v63, %v2391_v24  ;;  %v3376_v56 = vmov 0  ;;  %v3388_v63 = vmov 0 }
  0xef   : > { %v378_v60 = vpop.permute.xlu1 %377  ;;  %v306_v61 = vpop.permute.xlu0 %305 }
  0xf0   : > { %vm382_vm6 = vcmp.ne.s32.totalorder %v378_v60, %v2366_v21  ;;  %vm310_vm7 = vcmp.ne.s32.totalorder %v306_v61, %v2368_v22  ;;  %408 = vrot.lane.b32.xlu1 %v2511_v52, %s2132_s21  ;;  %1586 = vmatmul.mubr.f32.vlgmr.msra.gmra.mxu0 %v482_v57  ;;  %v3385_v61 = vmov 0 }
  0xf1   : > { %vm385_vm8 = vmor %vm373_vm1, %vm382_vm6  ;;  %1636 = vmatpush3.msra.mxu0 %v2135_v20  ;;  %1588 = vmatprep.mubr.msk.f32.mxu0 %vm3327_vm3, %v2134_v19 }
  0xf2   : > { %v2548_v0 = vsel %vm385_vm8, %v2366_v21, 4294967295  ;;  %vm313_vm12 = vmor %vm301_vm2, %vm310_vm7  ;;  %1637 = vmatprep.subr.mxu0 %v2134_v19 }
  0xf3   : > { %v2554_v1 = vsel %vm313_vm12, %v2368_v22, 4294967295  ;;  %1638 = vmatpush3.msra.mxu0 %v2135_v20  ;;  %v368_v2 = vpop.permute.xlu1 %367  ;;  %v296_v3 = vpop.permute.xlu0 %295  ;;  %vm3325_vm0 = vcmp.eq.s32.totalorder %v2548_v0, 1  ;;  %vm362_vm1 = vmor %vm350_vm9, %vm359_vm10  ;;  %v397_v12 = vrot.slane %v2548_v0, 1  ;;  %v391_v33 = vrot.slane %v2548_v0, 7 }
  0xf4   : > { %vm371_vm6 = vcmp.ne.s32.totalorder %v368_v2, %v2389_v23  ;;  %1639 = vmatprep.subr.mxu0 %v2134_v19  ;;  %332 = vrot.lane.b32.xlu0 %v2554_v1, %s2133_s25  ;;  %vm3329_vm2 = vcmp.eq.s32.totalorder %v2554_v1, 1  ;;  %v1404_v4 = vsel %vm3325_vm0, 1.0, %v2134_v19  ;;  %vm2566_vm7 = vmor %vm277_vm14, %vm287_vm15  ;;  %vm299_vm8 = vcmp.ne.s32.totalorder %v296_v3, %v2391_v24 }
  0xf5   : > { %404 = vrot.lane.b32.xlu1 %v2548_v0, %s2133_s25  ;;  %1640 = vmatpush3.msra.mxu0 %v2135_v20  ;;  %v1401_v6 = vsel %vm3329_vm2, 1.0, %v2134_v19  ;;  %vm374_vm9 = vmor %vm362_vm1, %vm371_vm6  ;;  %v325_v11 = vrot.slane %v2554_v1, 1  ;;  %v2602_v15 = vsel %vm281_vm5, %v396_v13, %v397_v12  ;;  %v319_v21 = vrot.slane %v2554_v1, 7 }
  0xf6   : > { %1641 = vmatprep.subr.mxu0 %v2134_v19  ;;  %v483_v7 = vadd.f32 %v1404_v4, %v1401_v6  ;;  %vm302_vm10 = vmor %vm2566_vm7, %vm299_vm8  ;;  %v2672_v38 = vsel %vm271_vm4, %v390_v29, %v391_v33  ;;  %v3390_v2 = vmov 0  ;;  %v3393_v3 = vmov 0 }
  0xf7   : > { %1642 = vmatpush3.msra.mxu0 %v2135_v20  ;;  %v380_v8 = vpop.permute.xlu1 %379  ;;  %v308_v9 = vpop.permute.xlu0 %307  ;;  %v328_v14 = vsel %vm281_vm5, %v324_v10, %v325_v11  ;;  %v2643_v32 = vsel %vm271_vm4, %v318_v27, %v319_v21  ;;  %v3396_v4 = vmov 0  ;;  %v3402_v6 = vmov 0 }
  0xf8   : > { %vm383_vm12 = vcmp.ne.s32.totalorder %v380_v8, %v2389_v23  ;;  %vm311_vm14 = vcmp.ne.s32.totalorder %v308_v9, %v2391_v24  ;;  %1643 = vmatprep.subr.mxu0 %v2134_v19  ;;  %338 = vrot.lane.b32.xlu0 %v2554_v1, %s2132_s21  ;;  %v3406_v8 = vmov 0 }
  0xf9   : > { %vm386_vm15 = vmor %vm374_vm9, %vm383_vm12  ;;  %1589 = vmatmul.mubr.f32.gmra.mxu0 %v483_v7  ;;  %410 = vrot.lane.b32.xlu1 %v2548_v0, %s2132_s21  ;;  %vm428_vm12 = vcmp.eq.s32.totalorder %v328_v14, 1  ;;  %v3404_v7 = vmov 0 }
  0xfa   : > { %v2605_v16 = vsel %vm386_vm15, %v2389_v23, 4294967295  ;;  %vm314_vm1 = vmor %vm302_vm10, %vm311_vm14  ;;  %1644 = vmatpush3.msra.mxu0 %v2135_v20  ;;  %1591 = vmatprep.mubr.msk.f32.mxu0 %vm3327_vm3, %v2134_v19  ;;  %vm3330_vm14 = vcmp.eq.s32.totalorder %v2495_v47, 2 }
  0xfb   : > { %v2611_v17 = vsel %vm314_vm1, %v2391_v24, 4294967295  ;;  %1645 = vmatprep.subr.mxu0 %v2134_v19  ;;  %vm3322_vm6 = vcmp.eq.s32.totalorder %v2605_v16, 1  ;;  %v392_v28 = vrot.slane %v2605_v16, 7  ;;  %v398_v37 = vrot.slane %v2605_v16, 1 }
  0xfc   : > { %1646 = vmatpush3.msra.mxu0 %v2135_v20  ;;  %334 = vrot.lane.b32.xlu0 %v2611_v17, %s2133_s25  ;;  %vm3323_vm7 = vcmp.eq.s32.totalorder %v2611_v17, 1  ;;  %v1405_v18 = vsel %vm3322_vm6, 1.0, %v2134_v19  ;;  %v320_v24 = vrot.slane %v2611_v17, 7  ;;  %v326_v31 = vrot.slane %v2611_v17, 1 }
  0xfd   : > { %1647 = vmatprep.subr.mxu0 %v2134_v19  ;;  %406 = vrot.lane.b32.xlu1 %v2605_v16, %s2133_s25  ;;  %v1402_v22 = vsel %vm3323_vm7, 1.0, %v2134_v19  ;;  %v395_v34 = vsel %vm271_vm4, %v392_v28, %v390_v29  ;;  %vm999_vm7 = vcmp.eq.s32.totalorder %v328_v14, 3  ;;  %v2693_v41 = vsel %vm281_vm5, %v397_v12, %v398_v37 }
  0xfe   : > { %1648 = vmatpush3.msra.mxu0 %v2135_v20  ;;  %v484_v23 = vadd.f32 %v1405_v18, %v1402_v22  ;;  %v323_v30 = vsel %vm271_vm4, %v320_v24, %v318_v27  ;;  %v2656_v35 = vsel %vm281_vm5, %v325_v11, %v326_v31  ;;  %vm446_vm6 = vcmp.eq.s32.totalorder %v395_v34, 1 }
  0xff   : > { %1649 = vmatprep.subr.mxu0 %v2134_v19  ;;  %vm422_vm8 = vcmp.eq.s32.totalorder %v323_v30, 1  ;;  %vm708_vm9 = vcmp.eq.s32.totalorder %v323_v30, 2  ;;  %vm993_vm1 = vcmp.eq.s32.totalorder %v323_v30, 3  ;;  %v2684_v40 = vsel %vm281_vm5, %v326_v31, %v324_v10 }
 0x100   : > { %1650 = vmatpush3.msra.mxu0 %v2135_v20  ;;  %340 = vrot.lane.b32.xlu0 %v2611_v17, %s2132_s21  ;;  %vm425_vm10 = vmor %vm3321_vm11, %vm422_vm8  ;;  %vm714_vm11 = vcmp.eq.s32.totalorder %v328_v14, 2  ;;  %v2702_v43 = vsel %vm271_vm4, %v319_v21, %v320_v24  ;;  %v2710_v44 = vsel %vm271_vm4, %v391_v33, %v392_v28  ;;  %vm1017_vm0 = vcmp.eq.s32.totalorder %v395_v34, 3 }
 0x101   : > { %1651 = vmatprep.subr.mxu0 %v2134_v19  ;;  %1592 = vmatmul.mubr.f32.gmra.mxu0 %v484_v23  ;;  %vm2662_vm15 = vmor %vm425_vm10, %vm428_vm12  ;;  %vm3324_vm10 = vcmp.eq.s32.totalorder %v2495_v47, 3  ;;  %v2722_v46 = vsel %vm281_vm5, %v398_v37, %v396_v13  ;;  %v3413_v23 = vmov 0  ;;  %v3417_v28 = vmov 0 }
 0x102   : > { %412 = vrot.lane.b32.xlu1 %v2605_v16, %s2132_s21  ;;  %1652 = vmatpush3.msra.mxu0 %v2135_v20  ;;  %vm711_vm8 = vmor %vm3330_vm14, %vm708_vm9  ;;  %vm709_vm14 = vcmp.eq.s32.totalorder %v2643_v32, 2  ;;  %v3420_v29 = vmov 0 }
 0x103   : > { %1653 = vmatprep.subr.mxu0 %v2134_v19  ;;  %1667 = vmatprep.mubr.msk.f32.mxu0 %vm3327_vm3, %v2134_v19  ;;  %vm2676_vm12 = vmor %vm711_vm8, %vm714_vm11  ;;  %vm732_vm8 = vcmp.eq.s32.totalorder %v395_v34, 2  ;;  %vm429_vm3 = vcmp.eq.s32.totalorder %v2656_v35, 1 }
 0x104   : > { %1654 = vmatpush3.msra.mxu0 %v2135_v20  ;;  %vm996_vm9 = vmor %vm3324_vm10, %vm993_vm1  ;;  %vm452_vm10 = vcmp.eq.s32.totalorder %v2602_v15, 1 }
 0x105   : > { %1655 = vmatprep.subr.mxu0 %v2134_v19  ;;  %vm2696_vm11 = vmor %vm996_vm9, %vm999_vm7  ;;  %vm3331_vm7 = vcmp.eq.s32.totalorder %v2511_v52, 2 }
 0x106   : > { %1656 = vmatpush3.msra.mxu0 %v2135_v20  ;;  %vm449_vm1 = vmor %vm3326_vm13, %vm446_vm6  ;;  %vm738_vm6 = vcmp.eq.s32.totalorder %v2602_v15, 2  ;;  %vm423_vm13 = vcmp.eq.s32.totalorder %v2643_v32, 1  ;;  %v1415_v26 = vsel %vm3331_vm7, 1.0, %v2134_v19 }
 0x107   : > { %1657 = vmatprep.subr.mxu0 %v2134_v19  ;;  %vm2714_vm9 = vmor %vm449_vm1, %vm452_vm10  ;;  %vm3332_vm10 = vcmp.eq.s32.totalorder %v2511_v52, 3 }
 0x108   : > { %1658 = vmatpush3.msra.mxu0 %v2135_v20  ;;  %v3367_v45 = vsel %vm2714_vm9, 4294967295, %v3366_v45  ;;  %vm735_vm4 = vmor %vm3331_vm7, %vm732_vm8  ;;  %vm1023_vm8 = vcmp.eq.s32.totalorder %v2602_v15, 3  ;;  %vm3373_vm7 = vcmp.eq.s32.totalorder %v2554_v1, 1  ;;  %vm3337_vm9 = vcmp.eq.s32.totalorder %v2611_v17, 3 }
 0x109   : > { %1659 = vmatprep.subr.mxu0 %v2134_v19  ;;  %vm2730_vm1 = vmor %vm735_vm4, %vm738_vm6  ;;  %vm3334_vm4 = vcmp.eq.s32.totalorder %v2554_v1, 2  ;;  %vm3333_vm6 = vcmp.eq.s32.totalorder %v2548_v0, 2 }
 0x10a   : > { %1660 = vmatpush3.msra.mxu0 %v2135_v20  ;;  %v3369_v48 = vsel %vm2730_vm1, 4294967295, %v3368_v48  ;;  %vm1020_vm5 = vmor %vm3332_vm10, %vm1017_vm0  ;;  %vm3372_vm0 = vcmp.eq.s32.totalorder %v2495_v47, 2  ;;  %vm715_vm1 = vcmp.eq.s32.totalorder %v2656_v35, 2  ;;  %v1413_v54 = vsel %vm3334_vm4, 1.0, %v2134_v19 }
 0x10b   : > { %1661 = vmatprep.subr.mxu0 %v2134_v19  ;;  %vm2746_vm2 = vmor %vm1020_vm5, %vm1023_vm8  ;;  %v1412_v50 = vsel %vm3372_vm0, 1.0, %v2134_v19  ;;  %v1416_v55 = vsel %vm3333_vm6, 1.0, %v2134_v19  ;;  %vm3335_vm0 = vcmp.eq.s32.totalorder %v2554_v1, 3  ;;  %vm447_vm6 = vcmp.eq.s32.totalorder %v2672_v38, 1 }
 0x10c   : > { %1662 = vmatpush3.msra.mxu0 %v2135_v20  ;;  %v3371_v49 = vsel %vm2746_vm2, 4294967295, %v3370_v49  ;;  %vm426_vm10 = vmor %vm3373_vm7, %vm423_vm13  ;;  %v768_v51 = vadd.f32 %v1415_v26, %v1412_v50  ;;  %vm453_vm7 = vcmp.eq.s32.totalorder %v2693_v41, 1  ;;  %v769_v57 = vadd.f32 %v1416_v55, %v1413_v54 }
 0x10d   : > { %1663 = vmatprep.subr.mxu0 %v2134_v19  ;;  %vm2759_vm5 = vmor %vm426_vm10, %vm429_vm3  ;;  %vm1000_vm3 = vcmp.eq.s32.totalorder %v2656_v35, 3 }
 0x10e   : > { %1664 = vmatpush3.msra.mxu0 %v2135_v20  ;;  %v3375_v53 = vsel %vm2759_vm5, 4294967295, %v3374_v53  ;;  %vm712_vm13 = vmor %vm3334_vm4, %vm709_vm14  ;;  %vm3378_vm14 = vmmov 0   ;;  %vm3379_vm4 = vcmp.eq.s32.totalorder %v2643_v32, 3  ;;  %vm3384_vm5 = vcmp.eq.s32.totalorder %v2548_v0, 1 }
 0x10f   : > { %1665 = vmatprep.subr.mxu0 %v2134_v19  ;;  %vm2780_vm8 = vmor %vm712_vm13, %vm715_vm1  ;;  %vm733_vm13 = vcmp.eq.s32.totalorder %v2672_v38, 2 }
 0x110   : > { %1666 = vmatpush3.msra.mxu0 %v2135_v20  ;;  %v3377_v56 = vsel %vm2780_vm8, 4294967295, %v3376_v56  ;;  %vm997_vm10 = vmor %vm3335_vm0, %vm3379_vm4  ;;  %vm3382_vm8 = vcmp.eq.s32.totalorder %v2611_v17, 2  ;;  %vm3383_vm4 = vcmp.eq.s32.totalorder %v2605_v16, 2  ;;  %vm739_vm0 = vcmp.eq.s32.totalorder %v2693_v41, 2 }
 0x111   : > { %1668 = vmatmul.mubr.f32.vlgmr.msra.gmra.mxu0 %v768_v51  ;;  %1717 = vmatprep.subr.mxu0 %v2134_v19  ;;  %vm2794_vm1 = vmor %vm997_vm10, %vm1000_vm3  ;;  %v1414_v59 = vsel %vm3382_vm8, 1.0, %v2134_v19  ;;  %v1417_v60 = vsel %vm3383_vm4, 1.0, %v2134_v19  ;;  %vm1024_vm8 = vcmp.eq.s32.totalorder %v2693_v41, 3  ;;  %vm3387_vm4 = vcmp.eq.s32.totalorder %v2548_v0, 2 }
 0x112   : > { %1718 = vmatpush3.msra.mxu0 %v2135_v20  ;;  %1670 = vmatprep.mubr.msk.f32.mxu0 %vm3378_vm14, %v2134_v19  ;;  %v3381_v58 = vsel %vm2794_vm1, 4294967295, %v3380_v58  ;;  %vm450_vm3 = vmor %vm3384_vm5, %vm447_vm6  ;;  %vm1018_vm1 = vcmp.eq.s32.totalorder %v2672_v38, 3  ;;  %v770_v62 = vadd.f32 %v1417_v60, %v1414_v59  ;;  %vm3336_vm6 = vcmp.eq.s32.totalorder %v2548_v0, 3 }
 0x113   : > { %1719 = vmatprep.subr.mxu0 %v2134_v19  ;;  %vm2810_vm10 = vmor %vm450_vm3, %vm453_vm7  ;;  %vm424_vm7 = vcmp.eq.s32.totalorder %v2702_v43, 1 }
 0x114   : > { %1720 = vmatpush3.msra.mxu0 %v2135_v20  ;;  %v3386_v61 = vsel %vm2810_vm10, 4294967295, %v3385_v61  ;;  %vm736_vm2 = vmor %vm3387_vm4, %vm733_vm13  ;;  %vm430_vm10 = vcmp.eq.s32.totalorder %v2684_v40, 1 }
 0x115   : > { %1671 = vmatmul.mubr.f32.gmra.mxu0 %v769_v57  ;;  %1721 = vmatprep.subr.mxu0 %v2134_v19  ;;  %vm2823_vm5 = vmor %vm736_vm2, %vm739_vm0  ;;  %vm710_vm2 = vcmp.eq.s32.totalorder %v2702_v43, 2  ;;  %vm716_vm0 = vcmp.eq.s32.totalorder %v2684_v40, 2 }
 0x116   : > { %1722 = vmatpush3.msra.mxu0 %v2135_v20  ;;  %1673 = vmatprep.mubr.msk.f32.mxu0 %vm3378_vm14, %v2134_v19  ;;  %v3389_v63 = vsel %vm2823_vm5, 4294967295, %v3388_v63  ;;  %vm1021_vm3 = vmor %vm3336_vm6, %vm1018_vm1  ;;  %vm3392_vm1 = vcmp.eq.s32.totalorder %v2611_v17, 1 }
 0x117   : > { %1723 = vmatprep.subr.mxu0 %v2134_v19  ;;  %vm2833_vm13 = vmor %vm1021_vm3, %vm1024_vm8  ;;  %vm995_vm8 = vcmp.eq.s32.totalorder %v2702_v43, 3  ;;  %vm1001_vm3 = vcmp.eq.s32.totalorder %v2684_v40, 3 }
 0x118   : > { %1724 = vmatpush3.msra.mxu0 %v2135_v20  ;;  %v3391_v2 = vsel %vm2833_vm13, 4294967295, %v3390_v2  ;;  %vm427_vm4 = vmor %vm3392_vm1, %vm424_vm7  ;;  %vm3395_vm13 = vcmp.eq.s32.totalorder %v2611_v17, 2 }
 0x119   : > { %1674 = vmatmul.mubr.f32.gmra.mxu0 %v770_v62  ;;  %1725 = vmatprep.subr.mxu0 %v2134_v19  ;;  %vm2845_vm6 = vmor %vm427_vm4, %vm430_vm10  ;;  %vm448_vm10 = vcmp.eq.s32.totalorder %v2710_v44, 1  ;;  %vm734_vm4 = vcmp.eq.s32.totalorder %v2710_v44, 2 }
 0x11a   : > { %1726 = vmatpush3.msra.mxu0 %v2135_v20  ;;  %1749 = vmatprep.mubr.msk.f32.mxu0 %vm3378_vm14, %v2134_v19  ;;  %v3394_v3 = vsel %vm2845_vm6, 4294967295, %v3393_v3  ;;  %vm713_vm5 = vmor %vm3395_vm13, %vm710_vm2  ;;  %vm3400_vm2 = vcmp.eq.s32.totalorder %v2605_v16, 1 }
 0x11b   : > { %1727 = vmatprep.subr.mxu0 %v2134_v19  ;;  %vm2856_vm7 = vmor %vm713_vm5, %vm716_vm0  ;;  %vm1019_vm5 = vcmp.eq.s32.totalorder %v2710_v44, 3 }
 0x11c   : > { %1728 = vmatpush3.msra.mxu0 %v2135_v20  ;;  %v3397_v4 = vsel %vm2856_vm7, 4294967295, %v3396_v4  ;;  %vm998_vm1 = vmor %vm3337_vm9, %vm995_vm8  ;;  %vm454_vm7 = vcmp.eq.s32.totalorder %v2722_v46, 1  ;;  %vm3338_vm8 = vcmp.eq.s32.totalorder %v2605_v16, 3  ;;  %vm3401_vm9 = vcmp.eq.s32.totalorder %v2605_v16, 2 }
 0x11d   : > { %1729 = vmatprep.subr.mxu0 %v2134_v19  ;;  %vm2866_vm13 = vmor %vm998_vm1, %vm1001_vm3  ;;  %vm740_vm3 = vcmp.eq.s32.totalorder %v2722_v46, 2  ;;  %v1429_v18 = vsel %vm3338_vm8, 1.0, %v2134_v19 }
 0x11e   : > { %1730 = vmatpush3.msra.mxu0 %v2135_v20  ;;  %v3399_v5 = vsel %vm2866_vm13, 4294967295, %v3398_v5  ;;  %vm451_vm0 = vmor %vm3400_vm2, %vm448_vm10  ;;  %vm1025_vm13 = vcmp.eq.s32.totalorder %v2722_v46, 3 }
 0x11f   : > { %1731 = vmatprep.subr.mxu0 %v2134_v19  ;;  %vm737_vm6 = vmor %vm3401_vm9, %vm734_vm4  ;;  %vm3410_vm4 = vcmp.eq.s32.totalorder %v2554_v1, 3 }
 0x120   : > { %1732 = vmatpush3.msra.mxu0 %v2135_v20  ;;  %vm1022_vm1 = vmor %vm3338_vm8, %vm1019_vm5  ;;  %v1425_v12 = vsel %vm3410_vm4, 1.0, %v2134_v19  ;;  %vm3412_vm5 = vcmp.eq.s32.totalorder %v2611_v17, 3 }
 0x121   : > { %1733 = vmatprep.subr.mxu0 %v2134_v19  ;;  %vm2885_vm10 = vmor %vm451_vm0, %vm454_vm7  ;;  %vm3409_vm7 = vcmp.eq.s32.totalorder %v2495_v47, 3  ;;  %v1426_v15 = vsel %vm3412_vm5, 1.0, %v2134_v19 }
 0x122   : > { %1734 = vmatpush3.msra.mxu0 %v2135_v20  ;;  %v3403_v6 = vsel %vm2885_vm10, 4294967295, %v3402_v6  ;;  %vm2890_vm2 = vmor %vm737_vm6, %vm740_vm3  ;;  %vm3408_vm6 = vcmp.eq.s32.totalorder %v2511_v52, 3  ;;  %v1424_v10 = vsel %vm3409_vm7, 1.0, %v2134_v19  ;;  %v1055_v21 = vadd.f32 %v1429_v18, %v1426_v15 }
 0x123   : > { %1735 = vmatprep.subr.mxu0 %v2134_v19  ;;  %v3405_v7 = vsel %vm2890_vm2, 4294967295, %v3404_v7  ;;  %vm2895_vm9 = vmor %vm1022_vm1, %vm1025_vm13  ;;  %v1427_v9 = vsel %vm3408_vm6, 1.0, %v2134_v19  ;;  %vm3411_vm13 = vcmp.eq.s32.totalorder %v2548_v0, 3  ;;  %vm3415_vm2 = vnez %v3367_v45 }
 0x124   : > { %1736 = vmatpush3.msra.mxu0 %v2135_v20  ;;  %v3407_v8 = vsel %vm2895_vm9, 4294967295, %v3406_v8  ;;  %v1053_v11 = vadd.f32 %v1427_v9, %v1424_v10  ;;  %v1428_v13 = vsel %vm3411_vm13, 1.0, %v2134_v19 }
 0x125   : > { %1737 = vmatprep.subr.mxu0 %v2134_v19  ;;  %v1054_v14 = vadd.f32 %v1428_v13, %v1425_v12 }
 0x126   : > { %1738 = vmatpush3.msra.mxu0 %v2135_v20 }
 0x127   : > { %1739 = vmatprep.subr.mxu0 %v2134_v19 }
 0x128   : > { %1740 = vmatpush3.msra.mxu0 %v2135_v20 }
 0x129   : > { %1741 = vmatprep.subr.mxu0 %v2134_v19 }
 0x12a   : > { %1742 = vmatpush3.msra.mxu0 %v2135_v20 }
 0x12b   : > { %1743 = vmatprep.subr.mxu0 %v2134_v19 }
 0x12c   : > { %1744 = vmatpush3.msra.mxu0 %v2135_v20 }
 0x12d   : > { %1745 = vmatprep.subr.mxu0 %v2134_v19 }
 0x12e   : > { %1746 = vmatpush3.msra.mxu0 %v2135_v20 }
 0x12f   : > { %1747 = vmatprep.subr.mxu0 %v2134_v19 }
 0x130   : > { %1748 = vmatpush3.msra.mxu0 %v2135_v20 }
 0x131   : > { %1750 = vmatmul.mubr.f32.vlgmr.msra.gmra.mxu0 %v1053_v11 }
 0x132   : > { %1752 = vmatprep.mubr.msk.f32.mxu0 %vm3378_vm14, %v2134_v19 }
 0x135   : > { %1753 = vmatmul.mubr.f32.gmra.mxu0 %v1054_v14 }
 0x136   : > { %1755 = vmatprep.mubr.msk.f32.mxu0 %vm3378_vm14, %v2134_v19  ;;  %vm3419_vm14 = vnez %v3371_v49 }
 0x139   : > { %1756 = vmatmul.mubr.f32.gmra.mxu0 %v1055_v21 }
 0x15a   : > { %v331_v22 = vpop.permute.xlu0 %330 }
 0x15b   : > { %vm1005_vm0 = vcmp.eq.s32.totalorder %v331_v22, 3  ;;  %vm434_vm3 = vcmp.eq.s32.totalorder %v331_v22, 1  ;;  %vm720_vm1 = vcmp.eq.s32.totalorder %v331_v22, 2 }
 0x15c   : > { %vm2934_vm6 = vmor %vm2696_vm11, %vm1005_vm0  ;;  %vm3416_vm11 = vnez %v3369_v48 }
 0x15d   : > { %v3414_v23 = vsel %vm2934_vm6, 4294967295, %v3413_v23  ;;  %vm437_vm7 = vmor %vm2662_vm15, %vm434_vm3 }
 0x15e   : > { %v403_v24 = vpop.permute.xlu1 %402  ;;  %v337_v27 = vpop.permute.xlu0 %336  ;;  %vm723_vm8 = vmor %vm2676_vm12, %vm720_vm1  ;;  %vm3422_vm12 = vcmp.eq.s32.totalorder %v2511_v52, 1 }
 0x15f   : > { %vm458_vm4 = vcmp.eq.s32.totalorder %v403_v24, 1  ;;  %vm744_vm13 = vcmp.eq.s32.totalorder %v403_v24, 2  ;;  %vm1029_vm5 = vcmp.eq.s32.totalorder %v403_v24, 3  ;;  %vm440_vm9 = vcmp.eq.s32.totalorder %v337_v27, 1 }
 0x160   : > { %vm461_vm10 = vmor %vm3415_vm2, %vm458_vm4  ;;  %vm726_vm15 = vcmp.eq.s32.totalorder %v337_v27, 2  ;;  %vm1011_vm2 = vcmp.eq.s32.totalorder %v337_v27, 3 }
 0x161   : > { %vm2946_vm0 = vmor %vm3416_vm11, %vm744_vm13  ;;  %vm3423_vm11 = vcmp.eq.s32.totalorder %v2511_v52, 2 }
 0x162   : > { %v3418_v28 = vsel %vm2946_vm0, 4294967295, %v3417_v28  ;;  %vm2952_vm6 = vmor %vm3419_vm14, %vm1029_vm5  ;;  %v409_v30 = vpop.permute.xlu1 %408  ;;  %vm3424_vm5 = vnez %v3414_v23 }
 0x163   : > { %v3421_v29 = vsel %vm2952_vm6, 4294967295, %v3420_v29  ;;  %vm443_vm3 = vmor %vm437_vm7, %vm440_vm9  ;;  %vm464_vm0 = vcmp.eq.s32.totalorder %v409_v30, 1  ;;  %vm3425_vm6 = vcmp.eq.s32.totalorder %v2511_v52, 3  ;;  %vm750_vm9 = vcmp.eq.s32.totalorder %v409_v30, 2 }
 0x164   : > { %vm580_vm1 = vmand %vm3422_vm12, %vm443_vm3  ;;  %vm3428_vm12 = vcmp.eq.s32.totalorder %v2495_v47, 1 }
 0x165   : > { %vm729_vm4 = vmor %vm723_vm8, %vm726_vm15  ;;  %vm1035_vm15 = vcmp.eq.s32.totalorder %v409_v30, 3  ;;  %v1406_v33 = vsel %vm580_vm1, 1.0, %v2134_v19 }
 0x166   : > { %vm865_vm13 = vmand %vm3423_vm11, %vm729_vm4  ;;  %v333_v32 = vpop.permute.xlu0 %332  ;;  %vm3429_vm4 = vnez %v3418_v28 }
 0x167   : > { %vm1014_vm14 = vmor %vm3424_vm5, %vm1011_vm2  ;;  %vm3430_vm2 = vcmp.eq.s32.totalorder %v2495_v47, 2  ;;  %v1418_v35 = vsel %vm865_vm13, 1.0, %v2134_v19  ;;  %vm435_vm5 = vcmp.eq.s32.totalorder %v333_v32, 1  ;;  %v405_v37 = vpop.permute.xlu1 %404  ;;  %vm1006_vm13 = vcmp.eq.s32.totalorder %v333_v32, 3 }
 0x168   : > { %vm2964_vm7 = vmand %vm3425_vm6, %vm1014_vm14  ;;  %vm3432_vm14 = vcmp.eq.s32.totalorder %v2495_v47, 3 }
 0x169   : > { %vm467_vm3 = vmor %vm461_vm10, %vm464_vm0  ;;  %vm3431_vm10 = vnez %v3421_v29  ;;  %v1430_v39 = vsel %vm2964_vm7, 1.0, %v2134_v19  ;;  %vm3437_vm7 = vnez %v3377_v56 }
 0x16a   : > { %vm589_vm8 = vmand %vm3428_vm12, %vm467_vm3  ;;  %v339_v41 = vpop.permute.xlu0 %338  ;;  %vm3433_vm3 = vmmov 0   ;;  %vm3434_vm12 = vnez %v3375_v53 }
 0x16b   : > { %vm753_vm11 = vmor %vm3429_vm4, %vm750_vm9  ;;  %v1409_v34 = vsel %vm589_vm8, 1.0, %v2134_v19  ;;  %vm721_vm9 = vcmp.eq.s32.totalorder %v333_v32, 2  ;;  %v411_v48 = vpop.permute.xlu1 %410 }
 0x16c   : > { %vm874_vm6 = vmand %vm3430_vm2, %vm753_vm11  ;;  %v598_v52 = vadd.f32 %v1409_v34, %v1406_v33  ;;  %vm745_vm11 = vcmp.eq.s32.totalorder %v405_v37, 2  ;;  %vm3440_vm2 = vnez %v3381_v58 }
 0x16d   : > { %v1421_v36 = vsel %vm874_vm6, 1.0, %v2134_v19  ;;  %vm1038_vm0 = vmor %vm3431_vm10, %vm1035_vm15  ;;  %vm459_vm15 = vcmp.eq.s32.totalorder %v405_v37, 1  ;;  %vm441_vm10 = vcmp.eq.s32.totalorder %v339_v41, 1 }
 0x16e   : > { %v2980_v38 = vadd.f32 %v1421_v36, %v1418_v35  ;;  %vm1159_vm1 = vmand %vm3432_vm14, %vm1038_vm0  ;;  %1627 = vmatmul.mubr.f32.vlgmr.msra.gmra.mxu1 %v598_v52  ;;  %vm3443_vm0 = vnez %v3386_v61  ;;  %vm1030_vm14 = vcmp.eq.s32.totalorder %v405_v37, 3  ;;  %v335_v51 = vpop.permute.xlu0 %334 }
 0x16f   : > { %v1433_v40 = vsel %vm1159_vm1, 1.0, %v2134_v19  ;;  %1677 = vmatpush3.msra.mxu1 %v2135_v20  ;;  %1629 = vmatprep.mubr.msk.f32.mxu1 %vm3433_vm3, %v2134_v19  ;;  %vm2995_vm8 = vmor %vm3434_vm12, %vm435_vm5  ;;  %vm3446_vm1 = vnez %v3389_v63  ;;  %v407_v56 = vpop.permute.xlu1 %406 }
 0x170   : > { %v2991_v42 = vadd.f32 %v1433_v40, %v1430_v39  ;;  %1678 = vmatprep.subr.mxu1 %v2134_v19  ;;  %vm3002_vm4 = vmor %vm3437_vm7, %vm721_vm9 }
 0x171   : > { %1679 = vmatpush3.msra.mxu1 %v2135_v20  ;;  %vm3009_vm6 = vmor %vm3440_vm2, %vm1006_vm13  ;;  %vm727_vm13 = vcmp.eq.s32.totalorder %v339_v41, 2 }
 0x172   : > { %1680 = vmatprep.subr.mxu1 %v2134_v19  ;;  %vm3016_vm5 = vmor %vm3443_vm0, %vm459_vm15  ;;  %vm3449_vm15 = vnez %v3391_v2  ;;  %vm1012_vm0 = vcmp.eq.s32.totalorder %v339_v41, 3  ;;  %v341_v60 = vpop.permute.xlu0 %340 }
 0x173   : > { %1681 = vmatpush3.msra.mxu1 %v2135_v20  ;;  %vm3023_vm9 = vmor %vm3446_vm1, %vm745_vm11  ;;  %vm3452_vm11 = vcmp.eq.s32.totalorder %v2548_v0, 1 }
 0x174   : > { %1682 = vmatprep.subr.mxu1 %v2134_v19  ;;  %vm444_vm12 = vmor %vm2995_vm8, %vm441_vm10  ;;  %vm3453_vm8 = vcmp.eq.s32.totalorder %v2548_v0, 2 }
 0x175   : > { %1683 = vmatpush3.msra.mxu1 %v2135_v20  ;;  %vm3033_vm7 = vmor %vm3449_vm15, %vm1030_vm14  ;;  %vm465_vm14 = vcmp.eq.s32.totalorder %v411_v48, 1  ;;  %vm3456_vm15 = vcmp.eq.s32.totalorder %v2548_v0, 3 }
 0x176   : > { %vm581_vm2 = vmand %vm3452_vm11, %vm444_vm12  ;;  %1684 = vmatprep.subr.mxu1 %v2134_v19 }
 0x177   : > { %vm730_vm1 = vmor %vm3002_vm4, %vm727_vm13  ;;  %1685 = vmatpush3.msra.mxu1 %v2135_v20  ;;  %vm751_vm4 = vcmp.eq.s32.totalorder %v411_v48, 2  ;;  %v1407_v53 = vsel %vm581_vm2, 1.0, %v2134_v19 }
 0x178   : > { %vm3045_vm10 = vmand %vm3453_vm8, %vm730_vm1  ;;  %1686 = vmatprep.subr.mxu1 %v2134_v19  ;;  %vm1036_vm1 = vcmp.eq.s32.totalorder %v411_v48, 3 }
 0x179   : > { %vm1015_vm12 = vmor %vm3009_vm6, %vm1012_vm0  ;;  %1687 = vmatpush3.msra.mxu1 %v2135_v20  ;;  %vm3459_vm6 = vcmp.eq.s32.totalorder %v2554_v1, 1  ;;  %v1419_v54 = vsel %vm3045_vm10, 1.0, %v2134_v19 }
 0x17a   : > { %vm3055_vm11 = vmand %vm3456_vm15, %vm1015_vm12  ;;  %1688 = vmatprep.subr.mxu1 %v2134_v19  ;;  %vm436_vm12 = vcmp.eq.s32.totalorder %v335_v51, 1  ;;  %vm722_vm15 = vcmp.eq.s32.totalorder %v335_v51, 2 }
 0x17b   : > { %vm468_vm13 = vmor %vm3016_vm5, %vm465_vm14  ;;  %1689 = vmatpush3.msra.mxu1 %v2135_v20  ;;  %vm3460_vm5 = vcmp.eq.s32.totalorder %v2554_v1, 2  ;;  %v1431_v58 = vsel %vm3055_vm11, 1.0, %v2134_v19  ;;  %vm3462_vm11 = vnez %v3394_v3 }
 0x17c   : > { %vm590_vm0 = vmand %vm3459_vm6, %vm468_vm13  ;;  %1690 = vmatprep.subr.mxu1 %v2134_v19  ;;  %vm460_vm13 = vcmp.eq.s32.totalorder %v407_v56, 1  ;;  %vm3465_vm6 = vnez %v3397_v4 }
 0x17d   : > { %vm754_vm8 = vmor %vm3023_vm9, %vm751_vm4  ;;  %v1410_v0 = vsel %vm590_vm0, 1.0, %v2134_v19  ;;  %1691 = vmatpush3.msra.mxu1 %v2135_v20  ;;  %vm3461_vm9 = vcmp.eq.s32.totalorder %v2554_v1, 3 }
 0x17e   : > { %vm875_vm2 = vmand %vm3460_vm5, %vm754_vm8  ;;  %v599_v55 = vadd.f32 %v1410_v0, %v1407_v53  ;;  %1692 = vmatprep.subr.mxu1 %v2134_v19  ;;  %vm3468_vm8 = vnez %v3399_v5  ;;  %v413_v5 = vpop.permute.xlu1 %412 }
 0x17f   : > { %vm1039_vm14 = vmor %vm3033_vm7, %vm1036_vm1  ;;  %1693 = vmatpush3.msra.mxu1 %v2135_v20  ;;  %v1422_v57 = vsel %vm875_vm2, 1.0, %v2134_v19  ;;  %vm1007_vm7 = vcmp.eq.s32.totalorder %v335_v51, 3  ;;  %vm746_vm1 = vcmp.eq.s32.totalorder %v407_v56, 2  ;;  %vm442_vm2 = vcmp.eq.s32.totalorder %v341_v60, 1 }
 0x180   : > { %vm1160_vm10 = vmand %vm3461_vm9, %vm1039_vm14  ;;  %1630 = vmatmul.mubr.f32.gmra.mxu1 %v599_v55  ;;  %1694 = vmatprep.subr.mxu1 %v2134_v19  ;;  %v3087_v59 = vadd.f32 %v1422_v57, %v1419_v54  ;;  %vm3471_vm14 = vnez %v3403_v6  ;;  %vm1031_vm9 = vcmp.eq.s32.totalorder %v407_v56, 3 }
 0x181   : > { %1632 = vmatprep.mubr.msk.f32.mxu1 %vm3433_vm3, %v2134_v19  ;;  %1695 = vmatpush3.msra.mxu1 %v2135_v20  ;;  %v1434_v61 = vsel %vm1160_vm10, 1.0, %v2134_v19  ;;  %vm3096_vm4 = vmor %vm3462_vm11, %vm436_vm12  ;;  %vm3474_vm10 = vnez %v3405_v7 }
 0x182   : > { %1696 = vmatprep.subr.mxu1 %v2134_v19  ;;  %v3101_v62 = vadd.f32 %v1434_v61, %v1431_v58  ;;  %vm3105_vm0 = vmor %vm3465_vm6, %vm722_vm15 }
 0x183   : > { %1697 = vmatpush3.msra.mxu1 %v2135_v20  ;;  %vm3112_vm5 = vmor %vm3468_vm8, %vm1007_vm7  ;;  %vm728_vm7 = vcmp.eq.s32.totalorder %v341_v60, 2 }
 0x184   : > { %1698 = vmatprep.subr.mxu1 %v2134_v19  ;;  %vm3119_vm12 = vmor %vm3471_vm14, %vm460_vm13  ;;  %vm3477_vm13 = vnez %v3407_v8  ;;  %vm1013_vm14 = vcmp.eq.s32.totalorder %v341_v60, 3 }
 0x185   : > { %1699 = vmatpush3.msra.mxu1 %v2135_v20  ;;  %vm3126_vm15 = vmor %vm3474_vm10, %vm746_vm1  ;;  %vm3480_vm1 = vcmp.eq.s32.totalorder %v2605_v16, 1 }
 0x186   : > { %1700 = vmatprep.subr.mxu1 %v2134_v19  ;;  %vm445_vm11 = vmor %vm3096_vm4, %vm442_vm2  ;;  %vm3481_vm4 = vcmp.eq.s32.totalorder %v2605_v16, 2 }
 0x187   : > { %1701 = vmatpush3.msra.mxu1 %v2135_v20  ;;  %vm3136_vm6 = vmor %vm3477_vm13, %vm1031_vm9  ;;  %vm466_vm9 = vcmp.eq.s32.totalorder %v413_v5, 1  ;;  %vm3484_vm13 = vcmp.eq.s32.totalorder %v2605_v16, 3 }
 0x188   : > { %vm582_vm8 = vmand %vm3480_vm1, %vm445_vm11  ;;  %1702 = vmatprep.subr.mxu1 %v2134_v19 }
 0x189   : > { %vm731_vm10 = vmor %vm3105_vm0, %vm728_vm7  ;;  %1703 = vmatpush3.msra.mxu1 %v2135_v20  ;;  %vm752_vm0 = vcmp.eq.s32.totalorder %v413_v5, 2  ;;  %v1408_v9 = vsel %vm582_vm8, 1.0, %v2134_v19 }
 0x18a   : > { %vm3148_vm2 = vmand %vm3481_vm4, %vm731_vm10  ;;  %1704 = vmatprep.subr.mxu1 %v2134_v19  ;;  %vm1037_vm10 = vcmp.eq.s32.totalorder %v413_v5, 3 }
 0x18b   : > { %vm1016_vm11 = vmor %vm3112_vm5, %vm1013_vm14  ;;  %1705 = vmatpush3.msra.mxu1 %v2135_v20  ;;  %vm3487_vm5 = vcmp.eq.s32.totalorder %v2611_v17, 1  ;;  %v1420_v10 = vsel %vm3148_vm2, 1.0, %v2134_v19 }
 0x18c   : > { %vm3158_vm1 = vmand %vm3484_vm13, %vm1016_vm11  ;;  %1706 = vmatprep.subr.mxu1 %v2134_v19 }
 0x18d   : > { %vm469_vm7 = vmor %vm3119_vm12, %vm466_vm9  ;;  %1707 = vmatpush3.msra.mxu1 %v2135_v20  ;;  %vm3488_vm12 = vcmp.eq.s32.totalorder %v2611_v17, 2  ;;  %v1432_v13 = vsel %vm3158_vm1, 1.0, %v2134_v19  ;;  %vm1272_vm1 = vcmask 16384  }
 0x18e   : > { %vm591_vm14 = vmand %vm3487_vm5, %vm469_vm7  ;;  %1758 = vmatprep.subr.mxu1 %v2134_v19 }
 0x18f   : > { %vm755_vm4 = vmor %vm3126_vm15, %vm752_vm0  ;;  %v1411_v16 = vsel %vm591_vm14, 1.0, %v2134_v19  ;;  %vm3489_vm15 = vcmp.eq.s32.totalorder %v2611_v17, 3 }
 0x190   : > { %vm876_vm8 = vmand %vm3488_vm12, %vm755_vm4  ;;  %v600_v11 = vadd.f32 %v1411_v16, %v1408_v9 }
 0x191   : > { %vm1040_vm9 = vmor %vm3136_vm6, %vm1037_vm10  ;;  %v1423_v12 = vsel %vm876_vm8, 1.0, %v2134_v19  ;;  %vm565_vm6 = vcmask 7168  }
 0x192   : > { %vm1161_vm11 = vmand %vm3489_vm15, %vm1040_vm9  ;;  %1633 = vmatmul.mubr.f32.gmra.mxu1 %v600_v11  ;;  %v885_v14 = vadd.f32 %v1423_v12, %v1420_v10 }
 0x193   : > { %1708 = vmatprep.mubr.msk.f32.mxu1 %vm3433_vm3, %v2134_v19  ;;  %v1435_v15 = vsel %vm1161_vm11, 1.0, %v2134_v19 }
 0x194   : > { %v1170_v18 = vadd.f32 %v1435_v15, %v1432_v13 }
 0x196   : > { %1709 = vmatmul.mubr.f32.vlgmr.msra.gmra.mxu1 %v2980_v38 }
 0x197   : > { %1759 = vmatpush3.msra.mxu1 %v2135_v20  ;;  %1711 = vmatprep.mubr.msk.f32.mxu1 %vm3433_vm3, %v2134_v19 }
 0x198   : > { %1760 = vmatprep.subr.mxu1 %v2134_v19 }
 0x199   : > { %1761 = vmatpush3.msra.mxu1 %v2135_v20 }
 0x19a   : > { %1712 = vmatmul.mubr.f32.gmra.mxu1 %v3087_v59  ;;  %1762 = vmatprep.subr.mxu1 %v2134_v19 }
 0x19b   : > { %1763 = vmatpush3.msra.mxu1 %v2135_v20  ;;  %1714 = vmatprep.mubr.msk.f32.mxu1 %vm3433_vm3, %v2134_v19 }
 0x19c   : > { %1764 = vmatprep.subr.mxu1 %v2134_v19 }
 0x19d   : > { %1765 = vmatpush3.msra.mxu1 %v2135_v20 }
 0x19e   : > { %1715 = vmatmul.mubr.f32.gmra.mxu1 %v885_v14  ;;  %1766 = vmatprep.subr.mxu1 %v2134_v19 }
 0x19f   : > { %1767 = vmatpush3.msra.mxu1 %v2135_v20  ;;  %1790 = vmatprep.mubr.msk.f32.mxu1 %vm3433_vm3, %v2134_v19 }
 0x1a0   : > { %1768 = vmatprep.subr.mxu1 %v2134_v19 }
 0x1a1   : > { %1769 = vmatpush3.msra.mxu1 %v2135_v20 }
 0x1a2   : > { %1770 = vmatprep.subr.mxu1 %v2134_v19 }
 0x1a3   : > { %1771 = vmatpush3.msra.mxu1 %v2135_v20 }
 0x1a4   : > { %1772 = vmatprep.subr.mxu1 %v2134_v19 }
 0x1a5   : > { %1773 = vmatpush3.msra.mxu1 %v2135_v20 }
 0x1a6   : > { %1774 = vmatprep.subr.mxu1 %v2134_v19 }
 0x1a7   : > { %1775 = vmatpush3.msra.mxu1 %v2135_v20 }
 0x1a8   : > { %1776 = vmatprep.subr.mxu1 %v2134_v19 }
 0x1a9   : > { %1777 = vmatpush3.msra.mxu1 %v2135_v20 }
 0x1aa   : > { %1778 = vmatprep.subr.mxu1 %v2134_v19 }
 0x1ab   : > { %1779 = vmatpush3.msra.mxu1 %v2135_v20 }
 0x1ac   : > { %1780 = vmatprep.subr.mxu1 %v2134_v19 }
 0x1ad   : > { %1781 = vmatpush3.msra.mxu1 %v2135_v20 }
 0x1ae   : > { %1782 = vmatprep.subr.mxu1 %v2134_v19 }
 0x1af   : > { %1783 = vmatpush3.msra.mxu1 %v2135_v20 }
 0x1b0   : > { %1784 = vmatprep.subr.mxu1 %v2134_v19  ;;  %v551_v17 = vpop.f32.mrf.mxu0 }
 0x1b1   : > { %1785 = vmatpush3.msra.mxu1 %v2135_v20  ;;  %v566_v27 = vsel %vm565_vm6, %v551_v17, 0.0 }
 0x1b2   : > { %1786 = vmatprep.subr.mxu1 %v2134_v19  ;;  %v1587_v21 = vpop.f32.mrf.mxu0 }
 0x1b3   : > { %1787 = vmatpush3.msra.mxu1 %v2135_v20 }
 0x1b4   : > { %1788 = vmatprep.subr.mxu1 %v2134_v19 }
 0x1b5   : > { %1789 = vmatpush3.msra.mxu1 %v2135_v20 }
 0x1b6   : > { %1791 = vmatmul.mubr.f32.vlgmr.msra.gmra.mxu1 %v2991_v42 }
 0x1b7   : > { %1793 = vmatprep.mubr.msk.f32.mxu1 %vm3433_vm3, %v2134_v19 }
 0x1b9   : > { %v556_v22 = vpop.f32.mrf.mxu0 }
 0x1ba   : > { %1794 = vmatmul.mubr.f32.gmra.mxu1 %v3101_v62  ;;  %v567_v24 = vsel %vm565_vm6, %v556_v22, 0.0 }
 0x1bb   : > { %1796 = vmatprep.mubr.msk.f32.mxu1 %vm3433_vm3, %v2134_v19  ;;  %v1590_v23 = vpop.f32.mrf.mxu0  ;;  %v568_v28 = vadd.f32 %v567_v24, %v566_v27 }
 0x1be   : > { %1797 = vmatmul.mubr.f32.gmra.mxu1 %v1170_v18 }
 0x1c1   : > { %v561_v20 = vpop.f32.mrf.mxu0 }
 0x1c2   : > { %v569_v29 = vsel %vm565_vm6, %v561_v20, 0.0 }
 0x1c3   : > { %v1593_v30 = vpop.f32.mrf.mxu0  ;;  %v570_v31 = vadd.f32 %v569_v29, %v568_v28 }
 0x1c5   : > { %571 = vadd.xlane.f32.xlu0 %v570_v31 }
 0x1d1   : > { %v837_v32 = vpop.f32.mrf.mxu0 }
 0x1d2   : > { %v851_v35 = vsel %vm565_vm6, %v837_v32, 0.0 }
 0x1d3   : > { %v1669_v33 = vpop.f32.mrf.mxu0 }
 0x1d5   : > { %v842_v34 = vpop.f32.mrf.mxu0 }
 0x1d6   : > { %v852_v52 = vsel %vm565_vm6, %v842_v34, 0.0 }
 0x1d7   : > { %v1672_v19 = vpop.f32.mrf.mxu0  ;;  %v853_v36 = vadd.f32 %v852_v52, %v851_v35 }
 0x1d9   : > { %v847_v37 = vpop.f32.mrf.mxu0 }
 0x1da   : > { %v854_v38 = vsel %vm565_vm6, %v847_v37, 0.0 }
 0x1db   : > { %v1675_v39 = vpop.f32.mrf.mxu0  ;;  %v855_v40 = vadd.f32 %v854_v38, %v853_v36 }
 0x1dd   : > { %856 = vadd.xlane.f32.xlu0 %v855_v40 }
 0x1f1   : > { %v1122_v41 = vpop.f32.mrf.mxu0 }
 0x1f2   : > { %v1136_v43 = vsel %vm565_vm6, %v1122_v41, 0.0 }
 0x1f3   : > { %v1751_v42 = vpop.f32.mrf.mxu0 }
 0x1f5   : > { %v1127_v47 = vpop.f32.mrf.mxu0 }
 0x1f6   : > { %v1137_v44 = vsel %vm565_vm6, %v1127_v47, 0.0 }
 0x1f7   : > { %v1138_v45 = vadd.f32 %v1137_v44, %v1136_v43  ;;  %v1754_v46 = vpop.f32.mrf.mxu0 }
 0x1f9   : > { %v1132_v48 = vpop.f32.mrf.mxu0 }
 0x1fa   : > { %v1139_v26 = vsel %vm565_vm6, %v1132_v48, 0.0 }
 0x1fb   : > { %v1757_v49 = vpop.f32.mrf.mxu0  ;;  %v1140_v50 = vadd.f32 %v1139_v26, %v1138_v45 }
 0x22e   : > { %v667_v51 = vpop.f32.mrf.mxu1 }
 0x22f   : > { %v681_v58 = vsel %vm565_vm6, %v667_v51, 0.0 }
 0x230   : > { %v1628_v53 = vpop.f32.mrf.mxu1 }
 0x240   : > { %v672_v0 = vpop.f32.mrf.mxu1 }
 0x241   : > { %v682_v56 = vsel %vm565_vm6, %v672_v0, 0.0 }
 0x242   : > { %v1631_v54 = vpop.f32.mrf.mxu1  ;;  %v683_v60 = vadd.f32 %v682_v56, %v681_v58 }
 0x24e   : > { %v572_v55 = vpop.xlane.xlu0 %571 }
 0x24f   : > { %v573_v57 = vrot.slane %v572_v55, 4 }
 0x251   : > { %v574_v59 = vadd.f32 %v573_v57, %v572_v55 }
 0x252   : > { %v677_v61 = vpop.f32.mrf.mxu1 }
 0x253   : > { %v684_v1 = vsel %vm565_vm6, %v677_v61, 0.0  ;;  %v575_v62 = vrot.slane %v574_v59, 2 }
 0x254   : > { %v1634_v63 = vpop.f32.mrf.mxu1  ;;  %v685_v2 = vadd.f32 %v684_v1, %v683_v60 }
 0x255   : > { %v576_v3 = vadd.f32 %v575_v62, %v574_v59 }
 0x256   : > { %686 = vadd.xlane.f32.xlu1 %v685_v2  ;;  %v952_v4 = vpop.f32.mrf.mxu1 }
 0x257   : > { %v577_v5 = vrot.slane %v576_v3, 1  ;;  %v966_v10 = vsel %vm565_vm6, %v952_v4, 0.0  ;;  %v415_v4 = vand.u32 127, %v269_v25 }
 0x258   : > { %v1710_v6 = vpop.f32.mrf.mxu1 }
 0x259   : > { %v578_v7 = vadd.f32 %v577_v5, %v576_v3  ;;  %vm699_vm3 = vcmp.eq.s32.totalorder %v415_v4, 0  ;;  %vm984_vm2 = vcmp.eq.s32.totalorder %v415_v4, 1  ;;  %vm1269_vm13 = vcmp.eq.s32.totalorder %v415_v4, 2 }
 0x25a   : > { %1141 = vadd.xlane.f32.xlu1 %v1140_v50  ;;  %v957_v8 = vpop.f32.mrf.mxu1 }
 0x25b   : > { %v967_v9 = vsel %vm565_vm6, %v957_v8, 0.0  ;;  %1806 = vpush %v578_v7 }
 0x25c   : > { %v1713_v16 = vpop.f32.mrf.mxu1  ;;  %v968_v11 = vadd.f32 %v967_v9, %v966_v10 }
 0x25e   : > { %v962_v12 = vpop.f32.mrf.mxu1 }
 0x25f   : > { %v969_v13 = vsel %vm565_vm6, %v962_v12, 0.0 }
 0x260   : > { %v1716_v14 = vpop.f32.mrf.mxu1  ;;  %v970_v15 = vadd.f32 %v969_v13, %v968_v11 }
 0x262   : > { %971 = vadd.xlane.f32.xlu0 %v970_v15 }
 0x266   : > { %v857_v31 = vpop.xlane.xlu0 %856 }
 0x267   : > { %v858_v32 = vrot.slane %v857_v31, 4 }
 0x269   : > { %v859_v33 = vadd.f32 %v858_v32, %v857_v31 }
 0x26b   : > { %v860_v19 = vrot.slane %v859_v33, 2 }
 0x26d   : > { %v861_v38 = vadd.f32 %v860_v19, %v859_v33 }
 0x26f   : > { %v862_v41 = vrot.slane %v861_v38, 1 }
 0x271   : > { %v863_v44 = vadd.f32 %v862_v41, %v861_v38 }
 0x276   : > { %v1237_v18 = vpop.f32.mrf.mxu1 }
 0x277   : > { %v1251_v24 = vsel %vm565_vm6, %v1237_v18, 0.0 }
 0x278   : > { %v1792_v17 = vpop.f32.mrf.mxu1 }
 0x27a   : > { %v1242_v21 = vpop.f32.mrf.mxu1 }
 0x27b   : > { %v1252_v22 = vsel %vm565_vm6, %v1242_v21, 0.0 }
 0x27c   : > { %v1795_v23 = vpop.f32.mrf.mxu1  ;;  %v1253_v27 = vadd.f32 %v1252_v22, %v1251_v24 }
 0x27e   : > { %v1247_v28 = vpop.f32.mrf.mxu1 }
 0x27f   : > { %v1254_v20 = vsel %vm565_vm6, %v1247_v28, 0.0 }
 0x280   : > { %v1798_v29 = vpop.f32.mrf.mxu1  ;;  %v1255_v30 = vadd.f32 %v1254_v20, %v1253_v27 }
 0x282   : > { %1256 = vadd.xlane.f32.xlu0 %v1255_v30 }
 0x28c   : > { %s1807_s15 = spop %1806 }
 0x28d   : > { %v695_v34 = vstv %s1807_s15 }
 0x28e   : > { %1939 = vrcp.f32 %v695_v34 }
 0x29b   : > { %v1940_v43 = vpop.eup %1939 }
 0x2df   : > { %v687_v52 = vpop.xlane.xlu1 %686 }
 0x2e0   : > { %v688_v35 = vrot.slane %v687_v52, 4 }
 0x2e2   : > { %v689_v36 = vadd.f32 %v688_v35, %v687_v52 }
 0x2e3   : > { %v1142_v51 = vpop.xlane.xlu1 %1141 }
 0x2e4   : > { %v690_v37 = vrot.slane %v689_v36, 2  ;;  %v1143_v0 = vrot.slane %v1142_v51, 4 }
 0x2e6   : > { %v691_v39 = vadd.f32 %v690_v37, %v689_v36  ;;  %v1144_v55 = vadd.f32 %v1143_v0, %v1142_v51 }
 0x2e8   : > { %v692_v40 = vrot.slane %v691_v39, 1  ;;  %v1145_v58 = vrot.slane %v1144_v55, 2 }
 0x2ea   : > { %v693_v42 = vadd.f32 %v692_v40, %v691_v39  ;;  %v1146_v60 = vadd.f32 %v1145_v58, %v1144_v55 }
 0x2eb   : > { %v972_v47 = vpop.xlane.xlu0 %971 }
 0x2ec   : > { %1808 = vpush %v693_v42  ;;  %v973_v45 = vrot.slane %v972_v47, 4  ;;  %v1147_v1 = vrot.slane %v1146_v60, 1 }
 0x2ed   : > { %1810 = vpush %v1940_v43 }
 0x2ee   : > { %1812 = vpush %v863_v44  ;;  %v974_v46 = vadd.f32 %v973_v45, %v972_v47  ;;  %v1148_v2 = vadd.f32 %v1147_v1, %v1146_v60 }
 0x2f0   : > { %v975_v48 = vrot.slane %v974_v46, 2 }
 0x2f2   : > { %v976_v26 = vadd.f32 %v975_v48, %v974_v46 }
 0x2f4   : > { %v977_v49 = vrot.slane %v976_v26, 1 }
 0x2f6   : > { %v978_v50 = vadd.f32 %v977_v49, %v976_v26 }
 0x2f8   : > { %1814 = vpush %v978_v50 }
 0x30b   : > { %v1257_v53 = vpop.xlane.xlu0 %1256 }
 0x30c   : > { %v1258_v54 = vrot.slane %v1257_v53, 4 }
 0x30e   : > { %v1259_v56 = vadd.f32 %v1258_v54, %v1257_v53 }
 0x310   : > { %v1260_v59 = vrot.slane %v1259_v56, 2 }
 0x312   : > { %v1261_v61 = vadd.f32 %v1260_v59, %v1259_v56 }
 0x314   : > { %v1262_v62 = vrot.slane %v1261_v61, 1 }
 0x316   : > { %v1263_v3 = vadd.f32 %v1262_v62, %v1261_v61 }
 0x31d   : > { %s1809_s7 = spop %1808 }
 0x31e   : > { %s1811_s30 = spop %1810 }
 0x31f   : > { %s698_s5 = smul.f32 %s1811_s30, %s1809_s7  ;;  %s1813_s12 = spop %1812 }
 0x320   : > { %v980_v57 = vstv %s1813_s12 }
 0x321   : > { %1941 = vrcp.f32 %v980_v57  ;;  %v700_v5 = vstv %s698_s5 }
 0x322   : > { %v701_v7 = vsel %vm699_vm3, %v700_v5, 0.0 }
 0x329   : > { %s1815_s29 = spop %1814 }
 0x32e   : > { %v1942_v63 = vpop.eup %1941 }
 0x32f   : > { %1816 = vpush %v1942_v63 }
 0x330   : > { %1818 = vpush %v1148_v2 }
 0x331   : > { %1820 = vpush %v1263_v3 }
 0x360   : > { %s1817_s23 = spop %1816 }
 0x361   : > { %s983_s8 = smul.f32 %s1817_s23, %s1815_s29  ;;  %s1819_s17 = spop %1818 }
 0x362   : > { %v1265_v6 = vstv %s1819_s17  ;;  %s1821_s26 = spop %1820 }
 0x363   : > { %v985_v8 = vstv %s983_s8  ;;  %1943 = vrcp.f32 %v1265_v6 }
 0x364   : > { %v986_v9 = vsel %vm984_vm2, %v985_v8, %v701_v7 }
 0x370   : > { %v1944_v16 = vpop.eup %1943 }
 0x371   : > { %1822 = vpush %v1944_v16 }
 0x3a2   : > { %s1823_s3 = spop %1822 }
 0x3a3   : > { %s1268_s18 = smul.f32 %s1823_s3, %s1821_s26 }
 0x3a5   : > { %v1270_v25 = vstv %s1268_s18 }
 0x3a6   : > { %v1271_v10 = vsel %vm1269_vm13, %v1270_v25, %v986_v9 }
 0x3a7   : > { %1273 = vst.msk [vmem:[%s216_s27] sm:$0x1] %vm1272_vm1, %v1271_v10 }
 0x3a8 PF: > { %s1436_s20 = sshll.u32 %s2113_s16, 4  ;;  %s1287_s15 = sshll.u32 %s216_s27, 4  ;;  %s1288_s15 = int_to_ptr.vmem [resolvable:$true] %s1287_s15 }
 0x3a9   : > { %s1285_s25 = scalar_lea.hbm %s3313_s2, %s1436_s20  ;;  %s1275_s7 = scalar_lea.sflag [#allocation6], %s2331_s0 }
 0x3aa   : > { %s2001_s30 = scalar_lea.vmem %s1288_s15, 16  ;;  %s2137_s5 = smov [#allocation9]  }
 0x3ab   : > { %p2002_p2 = scmp.ne.s32.totalorder %s1288_s15, %s2001_s30  ;;  %s2005_s12 = sshll.u32 %s2137_s5, 4  ;;  %s2006_s12 = int_to_ptr.vmem [resolvable:$false] %s2005_s12 }
 0x3ac   : > { %s2007_s29 = scalar_lea.vmem %s2006_s12, 32  ;;  %p2008_p1 = scmp.lt.s32.totalorder %s1288_s15, %s2006_s12 }
 0x3ad   : > { %p2003_p6 = pnand %p2002_p2, %p2298_p12  ;;  %p2009_p4 = scmp.lt.s32.totalorder %s2007_s29, %s2001_s30 }
 0x3af   : > { %p2004_p9 = pneg %p2003_p6  ;;  %p2010_p8 = por %p2009_p4, %p2008_p1 }
 0x3b1   : > { %p2011_p3 = pnand %p2010_p8, %p2004_p9 }
 0x3b3   : > { %2014 = shalt.err (!%p2011_p3)
}
 0x3b4   : > { %s2015_s16 = scalar_lea.hbm %s1285_s25, 16  ;;  %s2019_s23 = scalar_lea.hbm %s3313_s2, 32 }
 0x3b5   : > { %p2016_p5 = scmp.ne.s32.totalorder %s1285_s25, %s2015_s16  ;;  %p2020_p0 = scmp.lt.s32.totalorder %s1285_s25, %s3313_s2 }
 0x3b6   : > { %p2021_p10 = scmp.lt.s32.totalorder %s2019_s23, %s2015_s16 }
 0x3b7   : > { %p2017_p11 = pnand %p2016_p5, %p2298_p12 }
 0x3b8   : > { %p2022_p2 = por %p2021_p10, %p2020_p0 }
 0x3b9   : > { %p2018_p7 = pneg %p2017_p11 }
 0x3bb   : > { %p2023_p6 = pnand %p2022_p2, %p2018_p7 }
 0x3bd   : > { %2026 = shalt.err (!%p2023_p6)
}
 0x3be   : > { %1828 = dma.vmem_to_hbm [thread:$0]  (%p2298_p12), %s1288_s15, 16, %s1285_s25, %s1275_s7  }
 0x3bf PF: > { %p1842_p9 = scmp.ge.s32.totalorder %s2125_s19, 2  ;;  %s1299_s26 = sand.u32 1, %s2085_s9  }
 0x3c0   : > { %s1300_s3 = scalar_lea.sflag [#allocation6], %s1299_s26 }
 0x3c1   : > { %p1838_p1 = pnand %p1842_p9, %p2302_p13 }
 0x3c3   : > { %p1839_p4 = pneg %p1838_p1 }
 0x3c5   : > { %2080 = dma.done.wait (%p1839_p4), %s1300_s3, 16  }
 0x3c6   : > { %2082 = vsyncadd (%p1839_p4), %s1300_s3, 4294967280  ;;  %s21_s19 = sadd.s32 1, %s2125_s19   ;;  %s3490_s15 = sld [smem:[#allocation13_spill]] }
 0x3c7   : > { %p18_p8 = scmp.ge.s32.totalorder %s21_s19, 10   ;;  %s3491_s16 = sld [smem:[#allocation14_spill]] }
 0x3c8   : > { %s3492_s17 = sld [smem:[#allocation15_spill]]  ;;  %s3494_s9 = smov %s2089_s10 }
 0x3c9   : > { %s3493_s18 = sld [smem:[#allocation16_spill]]  ;;  %s3495_s10 = smov %s2093_s11 }
 0x3ca   : > { %s3496_s11 = smov %s2283_s6  ;;  %s3497_s12 = smov %s2101_s13 }
 0x3cb   : > { %s3498_s13 = smov %s2105_s14  ;;  %s3499_s14 = smov %s2248_s4 }
 0x3cc   :  { %20 = sbr.rel (!%p18_p8) target bundleno = 13 (0xd), region = 98 }
 0x3d1   :  { %1304 = vsyncpa [#allocation5], 1 }
 0x3d2   :  { %1306 = vsyncpa [#allocation5 + $0x1], 1 }
 0x3d3   :  { %1307 = vsyncpa [#allocation8], 1 }
 0x3d4   :  { %1309 = vsyncpa [#allocation8 + $0x1], 1 }
 0x3d5   :  { %1310 = vsyncpa [#allocation6], 1 }
 0x3d6   :  { %1312 = vsyncpa [#allocation6 + $0x1], 1 }

</bundles_post_ra>
